<compile_context>
chip_gen: v6e
topology: v6e:2x2x1
jax: 0.10.0
libtpu: 0.0.40
codegen_flags: <defaults>
</compile_context>

<pallas_src>
import jax
import jax.numpy as jnp
from jax.experimental import pallas as pl
from jax.experimental.pallas import tpu as pltpu

_LANES = 1024                    # lane-dense last dim (8 full vregs wide)
_MAX_TILE_ROWS = 1024            # (1024, 1024) f32 tile = 4 MiB
_MIN_GRID_STEPS = 4              # keep >= 4 grid steps (2 per TC on v7x)
_VMEM_LIMIT_BYTES = 32 * 1024 * 1024


def _regression_kernel(wb_ref, x_ref, o_ref):
    # wb_ref: SMEM f32[2] (scalar-prefetched): wb_ref[0] = w, wb_ref[1] = b
    # x_ref/o_ref: VMEM (tile_rows, 1024) tiles
    x = x_ref[...].astype(jnp.float32)
    o_ref[...] = (wb_ref[0] * x + wb_ref[1]).astype(o_ref.dtype)


def _dim_semantics():
    """CORE_PARALLEL on v7x (2 TCs/chip); plain 'parallel' elsewhere."""
    try:
        kind = jax.devices()[0].device_kind.lower()
    except Exception:
        kind = ""
    if "v7" in kind:
        return (pltpu.CORE_PARALLEL,)
    return ("parallel",)


def _choose_tile_rows(rows):
    """Largest tile <= _MAX_TILE_ROWS that still yields >= _MIN_GRID_STEPS."""
    if rows <= 8 * _MIN_GRID_STEPS:
        return rows                                  # single full-dim block
    t = min(_MAX_TILE_ROWS, pl.cdiv(rows, _MIN_GRID_STEPS))
    t = max(8, (t // 8) * 8)                         # sublane multiple of 8
    return min(t, rows)


def _regression_pallas_2d(x2d, wb):
    """x2d: (rows, 1024); wb: f32[2]. Returns w*x2d + b in x2d.dtype."""
    rows, lanes = x2d.shape
    tile_rows = _choose_tile_rows(rows)
    grid = (pl.cdiv(rows, tile_rows),)
    n_elems = rows * lanes
    itemsize = jnp.dtype(x2d.dtype).itemsize

    return pl.pallas_call(
        _regression_kernel,
        out_shape=jax.ShapeDtypeStruct((rows, lanes), x2d.dtype),
        grid_spec=pltpu.PrefetchScalarGridSpec(
            num_scalar_prefetch=1,        # wb -> SMEM, passed first to kernel
            grid=grid,
            in_specs=[pl.BlockSpec((tile_rows, lanes), lambda i, wb_ref: (i, 0))],
            out_specs=pl.BlockSpec((tile_rows, lanes), lambda i, wb_ref: (i, 0)),
        ),
        compiler_params=pltpu.CompilerParams(
            dimension_semantics=_dim_semantics(),
            vmem_limit_bytes=_VMEM_LIMIT_BYTES),
        cost_estimate=pl.CostEstimate(
            flops=2 * n_elems,
            transcendentals=0,
            bytes_accessed=2 * n_elems * itemsize),
    )(wb, x2d)


def regression_forward(x, w, b, *, min_pallas_elems=1 << 20):
    """y = w * x + b, elementwise. w, b: f32[1].

    Small inputs use the fused XLA multiply-add (a pallas_call would be pure
    launch overhead); large inputs stream through the tiled Pallas kernel.
    """
    w32 = w.astype(jnp.float32)
    b32 = b.astype(jnp.float32)

    def xla_path(v):
        return (w32[0] * v.astype(jnp.float32) + b32[0]).astype(v.dtype)

    if x.size < min_pallas_elems:
        return xla_path(x)

    orig_shape = x.shape
    x_flat = x.reshape(-1)
    n = x_flat.shape[0]
    n_aligned = (n // _LANES) * _LANES
    if n_aligned == 0:
        return xla_path(x)

    wb = jnp.concatenate([w32, b32])          # f32[2] in SMEM (always f32)

    if n_aligned == n:
        # Zero-copy path: reshape is a bitcast; ideal 1 read + 1 write of x.
        y = _regression_pallas_2d(x_flat.reshape(n // _LANES, _LANES), wb)
        return y.reshape(orig_shape)

    # Ragged path: Pallas on the 1024-aligned prefix, fused XLA on the tail.
    head = _regression_pallas_2d(
        x_flat[:n_aligned].reshape(n_aligned // _LANES, _LANES), wb)
    tail = xla_path(x_flat[n_aligned:])
    return jnp.concatenate([head.reshape(-1), tail]).reshape(orig_shape)


if __name__ == "__main__":
    key = jax.random.PRNGKey(0)
    kw, kb, kx1, kx2 = jax.random.split(key, 4)

    # Deterministic "torch.rand([1])"-style init
    w = jax.random.uniform(kw, (1,), dtype=jnp.float32)
    b = jax.random.uniform(kb, (1,), dtype=jnp.float32)

    # 1) Original 9-element data from the reference script -> fused XLA path.
    x_small = jnp.array([1, 5, 10, 10, 25, 50, 70, 75, 100], dtype=jnp.float32)
    y_small = regression_forward(x_small, w, b)
    jax.block_until_ready(y_small)
    assert jnp.allclose(y_small, w[0] * x_small + b[0], atol=1e-6)

    # 2) LANES-aligned input -> zero-copy Pallas path
    #    (flattens to (1024, 1024), tile_rows=256, grid=4).
    x_big = jax.random.normal(kx1, (512, 2048), dtype=jnp.float32) * 100.0
    y_big = regression_forward(x_big, w, b)
    jax.block_until_ready(y_big)
    assert jnp.allclose(y_big, w[0] * x_big + b[0], rtol=1e-6, atol=1e-4)

    # 3) Ragged length -> Pallas on the aligned prefix + XLA tail
    #    (292 aligned rows, grid=5, 993-element tail).
    x_rag = jax.random.normal(kx2, (300_001,), dtype=jnp.float32) * 10.0
    y_rag = regression_forward(x_rag, w, b, min_pallas_elems=1024)
    jax.block_until_ready(y_rag)
    assert jnp.allclose(y_rag, w[0] * x_rag + b[0], rtol=1e-6, atol=1e-4)

    print("KERNEL_OK")
</pallas_src>

<mosaic_0001>
module attributes {stable_mosaic.version = 11 : i64} {
  func.func @_regression_kernel(%arg0: i32, %arg1: memref<2xf32, #tpu.memory_space<smem>>, %arg2: memref<256x1024xf32, #tpu.memory_space<vmem>>, %arg3: memref<256x1024xf32, #tpu.memory_space<vmem>>) attributes {dimension_semantics = [#tpu.dimension_semantics<parallel>], iteration_bounds = array<i64: 4>, scalar_prefetch = 1 : i64, scratch_operands = 0 : i64, tpu.core_type = #tpu.core_type<tc>, window_params = [{transform_indices = @transform_0, window_bounds = array<i64: 256, 1024>}, {transform_indices = @transform_1, window_bounds = array<i64: 256, 1024>}]} {
    %c0 = arith.constant 0 : index
    %c0_0 = arith.constant 0 : index
    %0 = vector.load %arg2[%c0, %c0_0] : memref<256x1024xf32, #tpu.memory_space<vmem>>, vector<256x1024xf32>
    %c0_1 = arith.constant 0 : index
    %1 = memref.load %arg1[%c0_1] : memref<2xf32, #tpu.memory_space<smem>>
    %2 = vector.broadcast %1 : f32 to vector<256x1024xf32>
    %3 = arith.mulf %2, %0 : vector<256x1024xf32>
    %c1 = arith.constant 1 : index
    %4 = memref.load %arg1[%c1] : memref<2xf32, #tpu.memory_space<smem>>
    %5 = vector.broadcast %4 : f32 to vector<256x1024xf32>
    %6 = arith.addf %3, %5 : vector<256x1024xf32>
    %c0_2 = arith.constant 0 : index
    %c0_3 = arith.constant 0 : index
    %7 = vector.load %arg3[%c0_2, %c0_3] : memref<256x1024xf32, #tpu.memory_space<vmem>>, vector<256x1024xf32>
    tpu.vector_store %arg3[%c0_2, %c0_3], %6 {strides = array<i32>} : memref<256x1024xf32, #tpu.memory_space<vmem>>, vector<256x1024xf32>,
    return
  }
  func.func @transform_0(%arg0: i32, %arg1: memref<2xf32, #tpu.memory_space<smem>>) -> (i32, i32) {
    %c0_i32 = arith.constant 0 : i32
    %c0_i32_0 = arith.constant 0 : i32
    return %arg0, %c0_i32 : i32, i32
  }
  func.func @transform_1(%arg0: i32, %arg1: memref<2xf32, #tpu.memory_space<smem>>) -> (i32, i32) {
    %c0_i32 = arith.constant 0 : i32
    %c0_i32_0 = arith.constant 0 : i32
    return %arg0, %c0_i32 : i32, i32
  }
}

</mosaic_0001>

<bundles_post_ra>
// kernel: tpu_custom_call.1
= control target key start
LH: loop header
LB: loop body
LE: loop exit
PB: predicated region body
PF: predicated region fallthrough
CT: control target
= control target key end

     0   :  { %s1435_s9 = smov [#allocation3]   ;;  %s2649_s0 = inlined_call_operand.hbm [shape: f32[2], index: 0, kind: input, shape index: {}]   ;;  %s2650_s1 = inlined_call_operand.hbm [shape: f32[1024,1024], index: 1, kind: input, shape index: {}]   ;;  %s2651_s2 = inlined_call_operand.hbm [shape: f32[1024,1024], index: 2, kind: output, shape index: {}]  }
   0x1   :  { %8 = dma.hbm_to_smem %s2649_s0, 16, %s1435_s9, [#allocation2] }
   0x2   :  { %1409 = dma.done.wait [#allocation2], 16 }
   0x3   :  { %1410 = vsyncadd [#allocation2], 4294967280 }
   0x4   :  { %10 = sfence }
   0x5   :  { %11 = vsyncpa [#allocation5], 0 }
   0x6   :  { %13 = vsyncpa [#allocation5 + $0x1], 0 }
   0x7   :  { %14 = vsyncpa [#allocation6], 0 }
   0x8   :  { %16 = vsyncpa [#allocation6 + $0x1], 0  ;;  %s1460_s12 = smov 0   ;;  %s1462_s13 = smov 0  }
   0x9   :  { %s1464_s14 = smov 0   ;;  %s1466_s15 = smov 0  }
   0xa LB: > { %s1481_s0 = sadd.s32 4294967295, %s1433_s15   ;;  %s1259_s16 = sadd.s32 4294967294, %s1433_s15   ;;  %s1433_s15 = sphi %s1466_s15, %s2665_s15   ;;  %s1429_s14 = sphi %s1464_s14, %s2664_s14   ;;  %s1425_s13 = sphi %s1462_s13, %s2663_s13   ;;  %s1421_s12 = sphi %s1460_s12, %s2662_s12  }
   0xb   : > { %s1485_s17 = sadd.s32 1, %s1433_s15   ;;  %s29_s18 = sadd.s32 1, %s1429_s14 }
   0xc   : > { %s26_s19 = ssub.s32 %s1433_s15, %s1485_s17  ;;  %p36_p0 = scmp.ne.s32.totalorder %s1429_s14, %s1425_s13 }
   0xd   : > { %p27_p1 = scmp.eq.s32.totalorder %s26_s19, 0  ;;  %p37_p2 = scmp.eq.s32.totalorder %s1433_s15, 0 }
   0xe   : > { %p42_p3 = scmp.ne.s32.totalorder %s1425_s13, %s1421_s12  ;;  %p43_p4 = scmp.eq.s32.totalorder %s1481_s0, 0 }
   0xf   : > { %s1497_s20 = scalar_select %p27_p1, %s1429_s14, %s29_s18  }
  0x10   : > { %p1499_p5 = por %p37_p2, %p36_p0  ;;  %p1503_p6 = por %p43_p4, %p42_p3 }
  0x11   : > { %p66_p7 = scmp.eq.s32.totalorder %s1481_s0, 3  ;;  %p72_p8 = scmp.eq.s32.totalorder %s1259_s16, 3 }
  0x12   : > { %s2655_s22 = scalar_select %p1503_p6, 1, 0 }
  0x13   : > { %p1292_p9 = scmp.lt.s32.totalorder %s1433_s15, 4  ;;  %p1509_p10 = por %p66_p7, %p36_p0 }
  0x14   : > { %p1513_p11 = por %p72_p8, %p42_p3  ;;  %s92_s25 = sand.u32 1, %s1429_s14  }
  0x15   : > { %s2656_s23 = scalar_select %p1509_p10, 1, 0 }
  0x16   : > { %s2657_s24 = scalar_select %p1513_p11, 1, 0 }
  0x17   : > { %s1277_s26 = sshll.u32 %s1433_s15, 15  ;;  %s1262_s27 = sshll.u32 %s92_s25, 11 }
  0x18   : > { %s1522_s30 = scalar_lea.hbm %s2650_s1, %s1277_s26  ;;  %s96_s3 = scalar_lea.vmem [#allocation4], %s1262_s27 }
  0x19   : > { %s104_s4 = sshll.u32 %s96_s3, 4  ;;  %p1526_p12 = pnand %p1292_p9, %p1499_p5  ;;  %s1530_s4 = int_to_ptr.vmem [resolvable:$true] %s104_s4 }
  0x1a   : > { %s1532_s6 = scalar_lea.sflag [#allocation5], %s92_s25  ;;  %s1339_s7 = scalar_lea.hbm %s1522_s30, 32768 }
  0x1b   : > { %p1340_p13 = scmp.ne.s32.totalorder %s1522_s30, %s1339_s7  ;;  %p1341_p0 = pneg %p1526_p12 }
  0x1c   : > { %s1344_s10 = scalar_lea.hbm %s2650_s1, 131072  ;;  %p1345_p3 = scmp.lt.s32.totalorder %s1522_s30, %s2650_s1 }
  0x1d   : > { %p1342_p1 = pnand %p1341_p0, %p1340_p13  ;;  %p1346_p4 = scmp.lt.s32.totalorder %s1344_s10, %s1339_s7 }
  0x1f   : > { %p1343_p2 = pneg %p1342_p1  ;;  %p1347_p5 = por %p1346_p4, %p1345_p3 }
  0x21   : > { %p1348_p7 = pnand %p1347_p5, %p1343_p2 }
  0x23   : > { %1351 = shalt.err (!%p1348_p7)
}
  0x24   : > { %s1352_s18 = scalar_lea.vmem %s1530_s4, 32768  ;;  %s1436_s19 = smov [#allocation4]  }
  0x25   : > { %p1353_p8 = scmp.ne.s32.totalorder %s1530_s4, %s1352_s18  ;;  %s1357_s21 = sshll.u32 %s1436_s19, 4  ;;  %s1358_s21 = int_to_ptr.vmem [resolvable:$false] %s1357_s21 }
  0x26   : > { %s1359_s25 = scalar_lea.vmem %s1358_s21, 65536  ;;  %p1360_p1 = scmp.lt.s32.totalorder %s1530_s4, %s1358_s21 }
  0x27   : > { %p1355_p9 = pnand %p1353_p8, %p1341_p0  ;;  %p1361_p11 = scmp.lt.s32.totalorder %s1359_s25, %s1352_s18 }
  0x29   : > { %p1356_p13 = pneg %p1355_p9  ;;  %p1362_p10 = por %p1361_p11, %p1360_p1 }
  0x2b   : > { %p1363_p6 = pnand %p1362_p10, %p1356_p13 }
  0x2d   : > { %1366 = shalt.err (!%p1363_p6)
}
  0x2e   : > { %s1437_s26 = smov 1024   ;;  %s1438_s27 = smov 64  }
  0x2f   : > { %1287 = dma.hbm_to_vmem [thread:$0]  (!%p1526_p12), %s1522_s30, 32768, %s1530_s4, %s1532_s6, %s1437_s26, %s1437_s26, %s1438_s27  }
  0x30   : > { %p1266_p0 = scmp.ge.s32.totalorder %s1433_s15, 1  ;;  %p112_p2 = scmp.lt.s32.totalorder %s1433_s15, 5 }
  0x32   : > { %p113_p3 = pnand %p1266_p0, %p112_p2 }
  0x33   : > { %s1556_s28 = sand.u32 (!%p113_p3), 1, %s1425_s13   ;;  %p2659_p6 = scmp.ne.s32.totalorder (!%p113_p3), %s2655_s22, 0 }
  0x34   : > { %116 = sbr.rel (%p113_p3) target bundleno = 235 (0xeb), region = 24  ;;  %s1267_s29 = sshll.u32 (!%p113_p3), %s1556_s28, 11 }
  0x35   : > { %s119_s3 = scalar_lea.sflag (!%p113_p3), [#allocation5], %s1556_s28  ;;  %s1562_s7 = scalar_lea.vmem (!%p113_p3), [#allocation4], %s1267_s29 }
  0x39   : > { %1412 = dma.done.wait (%p2659_p6), %s119_s3, 32768  }
  0x3a   : > { %1414 = vsyncadd (%p2659_p6), %s119_s3, 4294934528  ;;  %s399_s30 = sld [smem:[#allocation3]]  ;;  %v143_v0 = vld [vmem:[%s1562_s7] sm:$0xff]  ;;  %v144_v2 = vld [vmem:[%s1562_s7 + $0x8] sm:$0xff]  ;;  %s1603_s22 = scalar_lea.vmem [#allocation7], %s1267_s29 }
  0x3b   : > { %s1269_s4 = sld [smem:[#allocation3 + $0x1]]  ;;  %v145_v3 = vld [vmem:[%s1562_s7 + $0x10] sm:$0xff]  ;;  %v146_v8 = vld [vmem:[%s1562_s7 + $0x18] sm:$0xff]  ;;  %v147_v9 = vld [vmem:[%s1562_s7 + $0x20] sm:$0xff]  ;;  %s1279_s5 = sshll.u32 %s1481_s0, 15 }
  0x3c   : > { %v148_v10 = vld [vmem:[%s1562_s7 + $0x28] sm:$0xff]  ;;  %v149_v14 = vld [vmem:[%s1562_s7 + $0x30] sm:$0xff]  ;;  %v150_v15 = vld [vmem:[%s1562_s7 + $0x38] sm:$0xff]  ;;  %s1186_s6 = sshll.u32 %s1603_s22, 4  ;;  %s2599_s9 = scalar_lea.hbm %s2651_s2, %s1279_s5  ;;  %s2601_s6 = int_to_ptr.vmem [resolvable:$true] %s1186_s6 }
  0x3d   : > { %v151_v16 = vld [vmem:[%s1562_s7 + $0x40] sm:$0xff]  ;;  %v152_v21 = vld [vmem:[%s1562_s7 + $0x48] sm:$0xff]  ;;  %v153_v22 = vld [vmem:[%s1562_s7 + $0x50] sm:$0xff]  ;;  %s1172_s10 = scalar_lea.sflag [#allocation6], %s1556_s28  ;;  %s1367_s11 = scalar_lea.vmem %s2601_s6, 32768 }
  0x3e   : > { %v154_v23 = vld [vmem:[%s1562_s7 + $0x58] sm:$0xff]  ;;  %v155_v28 = vld [vmem:[%s1562_s7 + $0x60] sm:$0xff]  ;;  %v156_v29 = vld [vmem:[%s1562_s7 + $0x68] sm:$0xff]  ;;  %p1368_p10 = scmp.ne.s32.totalorder %s2601_s6, %s1367_s11  ;;  %p2660_p11 = scmp.ne.s32.totalorder %s2656_s23, 0 }
  0x3f   : > { %v157_v30 = vld [vmem:[%s1562_s7 + $0x70] sm:$0xff]  ;;  %v158_v35 = vld [vmem:[%s1562_s7 + $0x78] sm:$0xff]  ;;  %v159_v40 = vld [vmem:[%s1562_s7 + $0x80] sm:$0xff]  ;;  %s1439_s16 = smov [#allocation7]  }
  0x40   : > { %v1569_v1 = vstv %s399_s30  ;;  %v160_v41 = vld [vmem:[%s1562_s7 + $0x88] sm:$0xff]  ;;  %v161_v42 = vld [vmem:[%s1562_s7 + $0x90] sm:$0xff]  ;;  %v162_v47 = vld [vmem:[%s1562_s7 + $0x98] sm:$0xff]  ;;  %p1369_p12 = pnand %p1368_p10, %p2660_p11  ;;  %s1371_s18 = sshll.u32 %s1439_s16, 4  ;;  %s1372_s18 = int_to_ptr.vmem [resolvable:$false] %s1371_s18 }
  0x41   : > { %v401_v4 = vmul.f32 %v1569_v1, %v143_v0  ;;  %v1574_v5 = vstv %s1269_s4  ;;  %v402_v6 = vmul.f32 %v1569_v1, %v144_v2  ;;  %v403_v7 = vmul.f32 %v1569_v1, %v145_v3  ;;  %v163_v48 = vld [vmem:[%s1562_s7 + $0xa0] sm:$0xff]  ;;  %v164_v49 = vld [vmem:[%s1562_s7 + $0xa8] sm:$0xff]  ;;  %v165_v54 = vld [vmem:[%s1562_s7 + $0xb0] sm:$0xff]  ;;  %s1373_s19 = scalar_lea.vmem %s1372_s18, 65536  ;;  %p1374_p5 = scmp.lt.s32.totalorder %s2601_s6, %s1372_s18 }
  0x42   : > { %v404_v11 = vmul.f32 %v1569_v1, %v146_v8  ;;  %v405_v12 = vmul.f32 %v1569_v1, %v147_v9  ;;  %v406_v13 = vmul.f32 %v1569_v1, %v148_v10  ;;  %v407_v20 = vmul.f32 %v1569_v1, %v149_v14  ;;  %v166_v59 = vld [vmem:[%s1562_s7 + $0xb8] sm:$0xff]  ;;  %v167_v0 = vld [vmem:[%s1562_s7 + $0xc0] sm:$0xff]  ;;  %v168_v2 = vld [vmem:[%s1562_s7 + $0xc8] sm:$0xff]  ;;  %p1370_p4 = pneg %p1369_p12  ;;  %p1375_p7 = scmp.lt.s32.totalorder %s1373_s19, %s1367_s11 }
  0x43   : > { %v659_v17 = vadd.f32 %v1574_v5, %v401_v4  ;;  %v660_v18 = vadd.f32 %v1574_v5, %v402_v6  ;;  %v661_v19 = vadd.f32 %v1574_v5, %v403_v7  ;;  %v408_v27 = vmul.f32 %v1569_v1, %v150_v15  ;;  %v169_v3 = vld [vmem:[%s1562_s7 + $0xd0] sm:$0xff]  ;;  %v170_v9 = vld [vmem:[%s1562_s7 + $0xd8] sm:$0xff]  ;;  %v171_v10 = vld [vmem:[%s1562_s7 + $0xe0] sm:$0xff] }
  0x44   : > { %v662_v24 = vadd.f32 %v1574_v5, %v404_v11  ;;  %v663_v25 = vadd.f32 %v1574_v5, %v405_v12  ;;  %v664_v26 = vadd.f32 %v1574_v5, %v406_v13  ;;  %v665_v31 = vadd.f32 %v1574_v5, %v407_v20  ;;  %v172_v11 = vld [vmem:[%s1562_s7 + $0xe8] sm:$0xff]  ;;  %p1376_p8 = por %p1375_p7, %p1374_p5 }
  0x45   : > { %915 = vst [vmem:[%s1603_s22] sm:$0xff] %v659_v17  ;;  %916 = vst [vmem:[%s1603_s22 + $0x8] sm:$0xff] %v660_v18  ;;  %v409_v32 = vmul.f32 %v1569_v1, %v151_v16  ;;  %v410_v33 = vmul.f32 %v1569_v1, %v152_v21  ;;  %v411_v34 = vmul.f32 %v1569_v1, %v153_v22  ;;  %v173_v16 = vld [vmem:[%s1562_s7 + $0xf0] sm:$0xff]  ;;  %v174_v21 = vld [vmem:[%s1562_s7 + $0xf8] sm:$0xff] }
  0x46   : > { %917 = vst [vmem:[%s1603_s22 + $0x10] sm:$0xff] %v661_v19  ;;  %918 = vst [vmem:[%s1603_s22 + $0x18] sm:$0xff] %v662_v24  ;;  %v666_v36 = vadd.f32 %v1574_v5, %v408_v27  ;;  %v412_v37 = vmul.f32 %v1569_v1, %v154_v23  ;;  %v413_v38 = vmul.f32 %v1569_v1, %v155_v28  ;;  %v176_v27 = vld [vmem:[%s1562_s7 + $0x108] sm:$0xff]  ;;  %v177_v28 = vld [vmem:[%s1562_s7 + $0x110] sm:$0xff]  ;;  %p1377_p9 = pnand %p1376_p8, %p1370_p4 }
  0x47   : > { %919 = vst [vmem:[%s1603_s22 + $0x20] sm:$0xff] %v663_v25  ;;  %920 = vst [vmem:[%s1603_s22 + $0x28] sm:$0xff] %v664_v26  ;;  %v414_v39 = vmul.f32 %v1569_v1, %v156_v29  ;;  %v667_v43 = vadd.f32 %v1574_v5, %v409_v32  ;;  %v668_v44 = vadd.f32 %v1574_v5, %v410_v33  ;;  %v175_v26 = vld [vmem:[%s1562_s7 + $0x100] sm:$0xff]  ;;  %v178_v33 = vld [vmem:[%s1562_s7 + $0x118] sm:$0xff] }
  0x48   : > { %921 = vst [vmem:[%s1603_s22 + $0x30] sm:$0xff] %v665_v31  ;;  %v669_v45 = vadd.f32 %v1574_v5, %v411_v34  ;;  %v415_v46 = vmul.f32 %v1569_v1, %v157_v30  ;;  %922 = vst [vmem:[%s1603_s22 + $0x38] sm:$0xff] %v666_v36  ;;  %v670_v50 = vadd.f32 %v1574_v5, %v412_v37  ;;  %v179_v34 = vld [vmem:[%s1562_s7 + $0x120] sm:$0xff] }
  0x49   : > { %v671_v51 = vadd.f32 %v1574_v5, %v413_v38  ;;  %v672_v52 = vadd.f32 %v1574_v5, %v414_v39  ;;  %v416_v53 = vmul.f32 %v1569_v1, %v158_v35  ;;  %923 = vst [vmem:[%s1603_s22 + $0x40] sm:$0xff] %v667_v43  ;;  %924 = vst [vmem:[%s1603_s22 + $0x48] sm:$0xff] %v668_v44  ;;  %v180_v35 = vld [vmem:[%s1562_s7 + $0x128] sm:$0xff] }
  0x4a   : > { %925 = vst [vmem:[%s1603_s22 + $0x50] sm:$0xff] %v669_v45  ;;  %v673_v55 = vadd.f32 %v1574_v5, %v415_v46  ;;  %v417_v56 = vmul.f32 %v1569_v1, %v159_v40  ;;  %v418_v57 = vmul.f32 %v1569_v1, %v160_v41  ;;  %v419_v58 = vmul.f32 %v1569_v1, %v161_v42  ;;  %v181_v40 = vld [vmem:[%s1562_s7 + $0x130] sm:$0xff]  ;;  %v182_v45 = vld [vmem:[%s1562_s7 + $0x138] sm:$0xff] }
  0x4b   : > { %926 = vst [vmem:[%s1603_s22 + $0x58] sm:$0xff] %v670_v50  ;;  %927 = vst [vmem:[%s1603_s22 + $0x60] sm:$0xff] %v671_v51  ;;  %v674_v60 = vadd.f32 %v1574_v5, %v416_v53  ;;  %v420_v61 = vmul.f32 %v1569_v1, %v162_v47  ;;  %v421_v62 = vmul.f32 %v1569_v1, %v163_v48  ;;  %v183_v50 = vld [vmem:[%s1562_s7 + $0x140] sm:$0xff]  ;;  %v184_v51 = vld [vmem:[%s1562_s7 + $0x148] sm:$0xff] }
  0x4c   : > { %928 = vst [vmem:[%s1603_s22 + $0x68] sm:$0xff] %v672_v52  ;;  %v422_v63 = vmul.f32 %v1569_v1, %v164_v49  ;;  %929 = vst [vmem:[%s1603_s22 + $0x70] sm:$0xff] %v673_v55  ;;  %v675_v4 = vadd.f32 %v1574_v5, %v417_v56  ;;  %v676_v6 = vadd.f32 %v1574_v5, %v418_v57  ;;  %v185_v52 = vld [vmem:[%s1562_s7 + $0x150] sm:$0xff]  ;;  %v186_v57 = vld [vmem:[%s1562_s7 + $0x158] sm:$0xff] }
  0x4d   : > { %v677_v7 = vadd.f32 %v1574_v5, %v419_v58  ;;  %v423_v8 = vmul.f32 %v1569_v1, %v165_v54  ;;  %930 = vst [vmem:[%s1603_s22 + $0x78] sm:$0xff] %v674_v60  ;;  %v678_v12 = vadd.f32 %v1574_v5, %v420_v61  ;;  %v679_v13 = vadd.f32 %v1574_v5, %v421_v62  ;;  %v187_v58 = vld [vmem:[%s1562_s7 + $0x160] sm:$0xff] }
  0x4e   : > { %v680_v14 = vadd.f32 %v1574_v5, %v422_v63  ;;  %v424_v15 = vmul.f32 %v1569_v1, %v166_v59  ;;  %931 = vst [vmem:[%s1603_s22 + $0x80] sm:$0xff] %v675_v4  ;;  %932 = vst [vmem:[%s1603_s22 + $0x88] sm:$0xff] %v676_v6  ;;  %v425_v18 = vmul.f32 %v1569_v1, %v167_v0  ;;  %v188_v59 = vld [vmem:[%s1562_s7 + $0x168] sm:$0xff]  ;;  %v189_v0 = vld [vmem:[%s1562_s7 + $0x170] sm:$0xff] }
  0x4f   : > { %933 = vst [vmem:[%s1603_s22 + $0x90] sm:$0xff] %v677_v7  ;;  %v681_v17 = vadd.f32 %v1574_v5, %v423_v8  ;;  %v426_v19 = vmul.f32 %v1569_v1, %v168_v2  ;;  %v427_v20 = vmul.f32 %v1569_v1, %v169_v3  ;;  %934 = vst [vmem:[%s1603_s22 + $0x98] sm:$0xff] %v678_v12  ;;  %v190_v7 = vld [vmem:[%s1562_s7 + $0x178] sm:$0xff]  ;;  %v191_v12 = vld [vmem:[%s1562_s7 + $0x180] sm:$0xff] }
  0x50   : > { %935 = vst [vmem:[%s1603_s22 + $0xa0] sm:$0xff] %v679_v13  ;;  %936 = vst [vmem:[%s1603_s22 + $0xa8] sm:$0xff] %v680_v14  ;;  %v682_v22 = vadd.f32 %v1574_v5, %v424_v15  ;;  %v428_v23 = vmul.f32 %v1569_v1, %v170_v9  ;;  %v429_v24 = vmul.f32 %v1569_v1, %v171_v10  ;;  %v192_v13 = vld [vmem:[%s1562_s7 + $0x188] sm:$0xff]  ;;  %v193_v14 = vld [vmem:[%s1562_s7 + $0x190] sm:$0xff] }
  0x51   : > { %v430_v25 = vmul.f32 %v1569_v1, %v172_v11  ;;  %937 = vst [vmem:[%s1603_s22 + $0xb0] sm:$0xff] %v681_v17  ;;  %v683_v29 = vadd.f32 %v1574_v5, %v425_v18  ;;  %v684_v30 = vadd.f32 %v1574_v5, %v426_v19  ;;  %v685_v31 = vadd.f32 %v1574_v5, %v427_v20  ;;  %v194_v19 = vld [vmem:[%s1562_s7 + $0x198] sm:$0xff]  ;;  %v195_v20 = vld [vmem:[%s1562_s7 + $0x1a0] sm:$0xff] }
  0x52   : > { %v431_v32 = vmul.f32 %v1569_v1, %v173_v16  ;;  %938 = vst [vmem:[%s1603_s22 + $0xb8] sm:$0xff] %v682_v22  ;;  %v686_v36 = vadd.f32 %v1574_v5, %v428_v23  ;;  %v687_v37 = vadd.f32 %v1574_v5, %v429_v24  ;;  %v432_v39 = vmul.f32 %v1569_v1, %v174_v21  ;;  %v196_v21 = vld [vmem:[%s1562_s7 + $0x1a8] sm:$0xff] }
  0x53   : > { %v688_v38 = vadd.f32 %v1574_v5, %v430_v25  ;;  %939 = vst [vmem:[%s1603_s22 + $0xc0] sm:$0xff] %v683_v29  ;;  %940 = vst [vmem:[%s1603_s22 + $0xc8] sm:$0xff] %v684_v30  ;;  %v433_v42 = vmul.f32 %v1569_v1, %v175_v26  ;;  %v434_v43 = vmul.f32 %v1569_v1, %v176_v27  ;;  %v197_v26 = vld [vmem:[%s1562_s7 + $0x1b0] sm:$0xff] }
  0x54   : > { %941 = vst [vmem:[%s1603_s22 + $0xd0] sm:$0xff] %v685_v31  ;;  %v689_v41 = vadd.f32 %v1574_v5, %v431_v32  ;;  %v435_v44 = vmul.f32 %v1569_v1, %v177_v28  ;;  %942 = vst [vmem:[%s1603_s22 + $0xd8] sm:$0xff] %v686_v36  ;;  %v690_v46 = vadd.f32 %v1574_v5, %v432_v39  ;;  %v198_v31 = vld [vmem:[%s1562_s7 + $0x1b8] sm:$0xff]  ;;  %v199_v36 = vld [vmem:[%s1562_s7 + $0x1c0] sm:$0xff] }
  0x55   : > { %943 = vst [vmem:[%s1603_s22 + $0xe0] sm:$0xff] %v687_v37  ;;  %944 = vst [vmem:[%s1603_s22 + $0xe8] sm:$0xff] %v688_v38  ;;  %v436_v47 = vmul.f32 %v1569_v1, %v178_v33  ;;  %v437_v48 = vmul.f32 %v1569_v1, %v179_v34  ;;  %v438_v49 = vmul.f32 %v1569_v1, %v180_v35  ;;  %v200_v37 = vld [vmem:[%s1562_s7 + $0x1c8] sm:$0xff]  ;;  %v201_v38 = vld [vmem:[%s1562_s7 + $0x1d0] sm:$0xff] }
  0x56   : > { %945 = vst [vmem:[%s1603_s22 + $0xf0] sm:$0xff] %v689_v41  ;;  %v691_v53 = vadd.f32 %v1574_v5, %v433_v42  ;;  %v692_v54 = vadd.f32 %v1574_v5, %v434_v43  ;;  %v693_v55 = vadd.f32 %v1574_v5, %v435_v44  ;;  %v439_v56 = vmul.f32 %v1569_v1, %v181_v40  ;;  %v202_v43 = vld [vmem:[%s1562_s7 + $0x1d8] sm:$0xff]  ;;  %v203_v44 = vld [vmem:[%s1562_s7 + $0x1e0] sm:$0xff] }
  0x57   : > { %946 = vst [vmem:[%s1603_s22 + $0xf8] sm:$0xff] %v690_v46  ;;  %v694_v60 = vadd.f32 %v1574_v5, %v436_v47  ;;  %v695_v61 = vadd.f32 %v1574_v5, %v437_v48  ;;  %v696_v62 = vadd.f32 %v1574_v5, %v438_v49  ;;  %v440_v63 = vmul.f32 %v1569_v1, %v182_v45  ;;  %v204_v45 = vld [vmem:[%s1562_s7 + $0x1e8] sm:$0xff] }
  0x58   : > { %947 = vst [vmem:[%s1603_s22 + $0x100] sm:$0xff] %v691_v53  ;;  %948 = vst [vmem:[%s1603_s22 + $0x108] sm:$0xff] %v692_v54  ;;  %v697_v2 = vadd.f32 %v1574_v5, %v439_v56  ;;  %v441_v3 = vmul.f32 %v1569_v1, %v183_v50  ;;  %v442_v4 = vmul.f32 %v1569_v1, %v184_v51  ;;  %v205_v50 = vld [vmem:[%s1562_s7 + $0x1f0] sm:$0xff] }
  0x59   : > { %949 = vst [vmem:[%s1603_s22 + $0x110] sm:$0xff] %v693_v55  ;;  %v443_v6 = vmul.f32 %v1569_v1, %v185_v52  ;;  %950 = vst [vmem:[%s1603_s22 + $0x118] sm:$0xff] %v694_v60  ;;  %v698_v8 = vadd.f32 %v1574_v5, %v440_v63  ;;  %v444_v9 = vmul.f32 %v1569_v1, %v186_v57  ;;  %v206_v55 = vld [vmem:[%s1562_s7 + $0x1f8] sm:$0xff]  ;;  %v207_v60 = vld [vmem:[%s1562_s7 + $0x200] sm:$0xff] }
  0x5a   : > { %951 = vst [vmem:[%s1603_s22 + $0x120] sm:$0xff] %v695_v61  ;;  %952 = vst [vmem:[%s1603_s22 + $0x128] sm:$0xff] %v696_v62  ;;  %v445_v10 = vmul.f32 %v1569_v1, %v187_v58  ;;  %v446_v11 = vmul.f32 %v1569_v1, %v188_v59  ;;  %v699_v15 = vadd.f32 %v1574_v5, %v441_v3  ;;  %v208_v61 = vld [vmem:[%s1562_s7 + $0x208] sm:$0xff]  ;;  %v209_v62 = vld [vmem:[%s1562_s7 + $0x210] sm:$0xff] }
  0x5b   : > { %953 = vst [vmem:[%s1603_s22 + $0x130] sm:$0xff] %v697_v2  ;;  %v700_v16 = vadd.f32 %v1574_v5, %v442_v4  ;;  %v701_v17 = vadd.f32 %v1574_v5, %v443_v6  ;;  %v447_v18 = vmul.f32 %v1569_v1, %v189_v0  ;;  %954 = vst [vmem:[%s1603_s22 + $0x138] sm:$0xff] %v698_v8  ;;  %v210_v4 = vld [vmem:[%s1562_s7 + $0x218] sm:$0xff]  ;;  %v211_v6 = vld [vmem:[%s1562_s7 + $0x220] sm:$0xff] }
  0x5c   : > { %v702_v22 = vadd.f32 %v1574_v5, %v444_v9  ;;  %v703_v23 = vadd.f32 %v1574_v5, %v445_v10  ;;  %v704_v24 = vadd.f32 %v1574_v5, %v446_v11  ;;  %v448_v25 = vmul.f32 %v1569_v1, %v190_v7  ;;  %955 = vst [vmem:[%s1603_s22 + $0x140] sm:$0xff] %v699_v15  ;;  %v212_v7 = vld [vmem:[%s1562_s7 + $0x228] sm:$0xff] }
  0x5d   : > { %956 = vst [vmem:[%s1603_s22 + $0x148] sm:$0xff] %v700_v16  ;;  %957 = vst [vmem:[%s1603_s22 + $0x150] sm:$0xff] %v701_v17  ;;  %v705_v27 = vadd.f32 %v1574_v5, %v447_v18  ;;  %v449_v28 = vmul.f32 %v1569_v1, %v191_v12  ;;  %v450_v29 = vmul.f32 %v1569_v1, %v192_v13  ;;  %v213_v12 = vld [vmem:[%s1562_s7 + $0x230] sm:$0xff]  ;;  %v214_v17 = vld [vmem:[%s1562_s7 + $0x238] sm:$0xff] }
  0x5e   : > { %v451_v30 = vmul.f32 %v1569_v1, %v193_v14  ;;  %958 = vst [vmem:[%s1603_s22 + $0x158] sm:$0xff] %v702_v22  ;;  %959 = vst [vmem:[%s1603_s22 + $0x160] sm:$0xff] %v703_v23  ;;  %v706_v32 = vadd.f32 %v1574_v5, %v448_v25  ;;  %v452_v33 = vmul.f32 %v1569_v1, %v194_v19  ;;  %v215_v22 = vld [vmem:[%s1562_s7 + $0x240] sm:$0xff]  ;;  %v216_v23 = vld [vmem:[%s1562_s7 + $0x248] sm:$0xff] }
  0x5f   : > { %960 = vst [vmem:[%s1603_s22 + $0x168] sm:$0xff] %v704_v24  ;;  %v453_v34 = vmul.f32 %v1569_v1, %v195_v20  ;;  %v454_v35 = vmul.f32 %v1569_v1, %v196_v21  ;;  %961 = vst [vmem:[%s1603_s22 + $0x170] sm:$0xff] %v705_v27  ;;  %v707_v39 = vadd.f32 %v1574_v5, %v449_v28  ;;  %v217_v24 = vld [vmem:[%s1562_s7 + $0x250] sm:$0xff] }
  0x60   : > { %v708_v40 = vadd.f32 %v1574_v5, %v450_v29  ;;  %v709_v41 = vadd.f32 %v1574_v5, %v451_v30  ;;  %v455_v42 = vmul.f32 %v1569_v1, %v197_v26  ;;  %962 = vst [vmem:[%s1603_s22 + $0x178] sm:$0xff] %v706_v32  ;;  %v710_v46 = vadd.f32 %v1574_v5, %v452_v33  ;;  %v218_v29 = vld [vmem:[%s1562_s7 + $0x258] sm:$0xff]  ;;  %v219_v30 = vld [vmem:[%s1562_s7 + $0x260] sm:$0xff] }
  0x61   : > { %v711_v47 = vadd.f32 %v1574_v5, %v453_v34  ;;  %v712_v48 = vadd.f32 %v1574_v5, %v454_v35  ;;  %v456_v49 = vmul.f32 %v1569_v1, %v198_v31  ;;  %963 = vst [vmem:[%s1603_s22 + $0x180] sm:$0xff] %v707_v39  ;;  %v457_v52 = vmul.f32 %v1569_v1, %v199_v36  ;;  %v220_v31 = vld [vmem:[%s1562_s7 + $0x268] sm:$0xff]  ;;  %v221_v36 = vld [vmem:[%s1562_s7 + $0x270] sm:$0xff] }
  0x62   : > { %964 = vst [vmem:[%s1603_s22 + $0x188] sm:$0xff] %v708_v40  ;;  %965 = vst [vmem:[%s1603_s22 + $0x190] sm:$0xff] %v709_v41  ;;  %v713_v51 = vadd.f32 %v1574_v5, %v455_v42  ;;  %v458_v53 = vmul.f32 %v1569_v1, %v200_v37  ;;  %v459_v54 = vmul.f32 %v1569_v1, %v201_v38  ;;  %v222_v41 = vld [vmem:[%s1562_s7 + $0x278] sm:$0xff] }
  0x63   : > { %966 = vst [vmem:[%s1603_s22 + $0x198] sm:$0xff] %v710_v46  ;;  %967 = vst [vmem:[%s1603_s22 + $0x1a0] sm:$0xff] %v711_v47  ;;  %v714_v56 = vadd.f32 %v1574_v5, %v456_v49  ;;  %v460_v57 = vmul.f32 %v1569_v1, %v202_v43  ;;  %v461_v58 = vmul.f32 %v1569_v1, %v203_v44  ;;  %v223_v46 = vld [vmem:[%s1562_s7 + $0x280] sm:$0xff]  ;;  %v224_v47 = vld [vmem:[%s1562_s7 + $0x288] sm:$0xff] }
  0x64   : > { %968 = vst [vmem:[%s1603_s22 + $0x1a8] sm:$0xff] %v712_v48  ;;  %v462_v59 = vmul.f32 %v1569_v1, %v204_v45  ;;  %969 = vst [vmem:[%s1603_s22 + $0x1b0] sm:$0xff] %v713_v51  ;;  %v715_v63 = vadd.f32 %v1574_v5, %v457_v52  ;;  %v716_v0 = vadd.f32 %v1574_v5, %v458_v53  ;;  %v225_v48 = vld [vmem:[%s1562_s7 + $0x290] sm:$0xff]  ;;  %v226_v53 = vld [vmem:[%s1562_s7 + $0x298] sm:$0xff] }
  0x65   : > { %v717_v2 = vadd.f32 %v1574_v5, %v459_v54  ;;  %v463_v3 = vmul.f32 %v1569_v1, %v205_v50  ;;  %970 = vst [vmem:[%s1603_s22 + $0x1b8] sm:$0xff] %v714_v56  ;;  %v718_v8 = vadd.f32 %v1574_v5, %v460_v57  ;;  %v719_v9 = vadd.f32 %v1574_v5, %v461_v58  ;;  %v227_v54 = vld [vmem:[%s1562_s7 + $0x2a0] sm:$0xff] }
  0x66   : > { %v720_v10 = vadd.f32 %v1574_v5, %v462_v59  ;;  %v464_v11 = vmul.f32 %v1569_v1, %v206_v55  ;;  %971 = vst [vmem:[%s1603_s22 + $0x1c0] sm:$0xff] %v715_v63  ;;  %972 = vst [vmem:[%s1603_s22 + $0x1c8] sm:$0xff] %v716_v0  ;;  %v465_v14 = vmul.f32 %v1569_v1, %v207_v60  ;;  %v228_v55 = vld [vmem:[%s1562_s7 + $0x2a8] sm:$0xff]  ;;  %v229_v60 = vld [vmem:[%s1562_s7 + $0x2b0] sm:$0xff] }
  0x67   : > { %973 = vst [vmem:[%s1603_s22 + $0x1d0] sm:$0xff] %v717_v2  ;;  %v721_v13 = vadd.f32 %v1574_v5, %v463_v3  ;;  %v466_v15 = vmul.f32 %v1569_v1, %v208_v61  ;;  %v467_v16 = vmul.f32 %v1569_v1, %v209_v62  ;;  %974 = vst [vmem:[%s1603_s22 + $0x1d8] sm:$0xff] %v718_v8  ;;  %v230_v2 = vld [vmem:[%s1562_s7 + $0x2b8] sm:$0xff]  ;;  %v231_v8 = vld [vmem:[%s1562_s7 + $0x2c0] sm:$0xff] }
  0x68   : > { %975 = vst [vmem:[%s1603_s22 + $0x1e0] sm:$0xff] %v719_v9  ;;  %976 = vst [vmem:[%s1603_s22 + $0x1e8] sm:$0xff] %v720_v10  ;;  %v722_v18 = vadd.f32 %v1574_v5, %v464_v11  ;;  %v468_v19 = vmul.f32 %v1569_v1, %v210_v4  ;;  %v469_v20 = vmul.f32 %v1569_v1, %v211_v6  ;;  %v232_v9 = vld [vmem:[%s1562_s7 + $0x2c8] sm:$0xff]  ;;  %v233_v10 = vld [vmem:[%s1562_s7 + $0x2d0] sm:$0xff] }
  0x69   : > { %v470_v21 = vmul.f32 %v1569_v1, %v212_v7  ;;  %977 = vst [vmem:[%s1603_s22 + $0x1f0] sm:$0xff] %v721_v13  ;;  %v723_v25 = vadd.f32 %v1574_v5, %v465_v14  ;;  %v724_v26 = vadd.f32 %v1574_v5, %v466_v15  ;;  %v725_v27 = vadd.f32 %v1574_v5, %v467_v16  ;;  %v234_v15 = vld [vmem:[%s1562_s7 + $0x2d8] sm:$0xff]  ;;  %v235_v16 = vld [vmem:[%s1562_s7 + $0x2e0] sm:$0xff] }
  0x6a   : > { %v471_v28 = vmul.f32 %v1569_v1, %v213_v12  ;;  %978 = vst [vmem:[%s1603_s22 + $0x1f8] sm:$0xff] %v722_v18  ;;  %v726_v32 = vadd.f32 %v1574_v5, %v468_v19  ;;  %v727_v33 = vadd.f32 %v1574_v5, %v469_v20  ;;  %v472_v35 = vmul.f32 %v1569_v1, %v214_v17  ;;  %v236_v17 = vld [vmem:[%s1562_s7 + $0x2e8] sm:$0xff] }
  0x6b   : > { %v728_v34 = vadd.f32 %v1574_v5, %v470_v21  ;;  %979 = vst [vmem:[%s1603_s22 + $0x200] sm:$0xff] %v723_v25  ;;  %980 = vst [vmem:[%s1603_s22 + $0x208] sm:$0xff] %v724_v26  ;;  %v473_v38 = vmul.f32 %v1569_v1, %v215_v22  ;;  %v474_v39 = vmul.f32 %v1569_v1, %v216_v23  ;;  %v237_v22 = vld [vmem:[%s1562_s7 + $0x2f0] sm:$0xff] }
  0x6c   : > { %981 = vst [vmem:[%s1603_s22 + $0x210] sm:$0xff] %v725_v27  ;;  %v729_v37 = vadd.f32 %v1574_v5, %v471_v28  ;;  %v475_v40 = vmul.f32 %v1569_v1, %v217_v24  ;;  %982 = vst [vmem:[%s1603_s22 + $0x218] sm:$0xff] %v726_v32  ;;  %v730_v42 = vadd.f32 %v1574_v5, %v472_v35  ;;  %v238_v27 = vld [vmem:[%s1562_s7 + $0x2f8] sm:$0xff]  ;;  %v239_v32 = vld [vmem:[%s1562_s7 + $0x300] sm:$0xff] }
  0x6d   : > { %983 = vst [vmem:[%s1603_s22 + $0x220] sm:$0xff] %v727_v33  ;;  %984 = vst [vmem:[%s1603_s22 + $0x228] sm:$0xff] %v728_v34  ;;  %v476_v43 = vmul.f32 %v1569_v1, %v218_v29  ;;  %v477_v44 = vmul.f32 %v1569_v1, %v219_v30  ;;  %v478_v45 = vmul.f32 %v1569_v1, %v220_v31  ;;  %v240_v33 = vld [vmem:[%s1562_s7 + $0x308] sm:$0xff]  ;;  %v241_v34 = vld [vmem:[%s1562_s7 + $0x310] sm:$0xff] }
  0x6e   : > { %985 = vst [vmem:[%s1603_s22 + $0x230] sm:$0xff] %v729_v37  ;;  %v731_v49 = vadd.f32 %v1574_v5, %v473_v38  ;;  %v732_v50 = vadd.f32 %v1574_v5, %v474_v39  ;;  %v733_v51 = vadd.f32 %v1574_v5, %v475_v40  ;;  %v479_v52 = vmul.f32 %v1569_v1, %v221_v36  ;;  %v242_v39 = vld [vmem:[%s1562_s7 + $0x318] sm:$0xff]  ;;  %v243_v40 = vld [vmem:[%s1562_s7 + $0x320] sm:$0xff] }
  0x6f   : > { %986 = vst [vmem:[%s1603_s22 + $0x238] sm:$0xff] %v730_v42  ;;  %v734_v56 = vadd.f32 %v1574_v5, %v476_v43  ;;  %v735_v57 = vadd.f32 %v1574_v5, %v477_v44  ;;  %v736_v58 = vadd.f32 %v1574_v5, %v478_v45  ;;  %v480_v59 = vmul.f32 %v1569_v1, %v222_v41  ;;  %v244_v41 = vld [vmem:[%s1562_s7 + $0x328] sm:$0xff] }
  0x70   : > { %987 = vst [vmem:[%s1603_s22 + $0x240] sm:$0xff] %v731_v49  ;;  %988 = vst [vmem:[%s1603_s22 + $0x248] sm:$0xff] %v732_v50  ;;  %v737_v61 = vadd.f32 %v1574_v5, %v479_v52  ;;  %v481_v62 = vmul.f32 %v1569_v1, %v223_v46  ;;  %v482_v63 = vmul.f32 %v1569_v1, %v224_v47  ;;  %v245_v46 = vld [vmem:[%s1562_s7 + $0x330] sm:$0xff] }
  0x71   : > { %989 = vst [vmem:[%s1603_s22 + $0x250] sm:$0xff] %v733_v51  ;;  %v483_v0 = vmul.f32 %v1569_v1, %v225_v48  ;;  %990 = vst [vmem:[%s1603_s22 + $0x258] sm:$0xff] %v734_v56  ;;  %v738_v3 = vadd.f32 %v1574_v5, %v480_v59  ;;  %v484_v4 = vmul.f32 %v1569_v1, %v226_v53  ;;  %v246_v51 = vld [vmem:[%s1562_s7 + $0x338] sm:$0xff]  ;;  %v247_v56 = vld [vmem:[%s1562_s7 + $0x340] sm:$0xff] }
  0x72   : > { %991 = vst [vmem:[%s1603_s22 + $0x260] sm:$0xff] %v735_v57  ;;  %992 = vst [vmem:[%s1603_s22 + $0x268] sm:$0xff] %v736_v58  ;;  %v485_v6 = vmul.f32 %v1569_v1, %v227_v54  ;;  %v486_v7 = vmul.f32 %v1569_v1, %v228_v55  ;;  %v739_v11 = vadd.f32 %v1574_v5, %v481_v62  ;;  %v248_v57 = vld [vmem:[%s1562_s7 + $0x348] sm:$0xff]  ;;  %v249_v58 = vld [vmem:[%s1562_s7 + $0x350] sm:$0xff] }
  0x73   : > { %993 = vst [vmem:[%s1603_s22 + $0x270] sm:$0xff] %v737_v61  ;;  %v740_v12 = vadd.f32 %v1574_v5, %v482_v63  ;;  %v741_v13 = vadd.f32 %v1574_v5, %v483_v0  ;;  %v487_v14 = vmul.f32 %v1569_v1, %v229_v60  ;;  %994 = vst [vmem:[%s1603_s22 + $0x278] sm:$0xff] %v738_v3  ;;  %v250_v63 = vld [vmem:[%s1562_s7 + $0x358] sm:$0xff]  ;;  %v251_v0 = vld [vmem:[%s1562_s7 + $0x360] sm:$0xff] }
  0x74   : > { %v742_v18 = vadd.f32 %v1574_v5, %v484_v4  ;;  %v743_v19 = vadd.f32 %v1574_v5, %v485_v6  ;;  %v744_v20 = vadd.f32 %v1574_v5, %v486_v7  ;;  %v488_v21 = vmul.f32 %v1569_v1, %v230_v2  ;;  %995 = vst [vmem:[%s1603_s22 + $0x280] sm:$0xff] %v739_v11  ;;  %v252_v2 = vld [vmem:[%s1562_s7 + $0x368] sm:$0xff] }
  0x75   : > { %996 = vst [vmem:[%s1603_s22 + $0x288] sm:$0xff] %v740_v12  ;;  %997 = vst [vmem:[%s1603_s22 + $0x290] sm:$0xff] %v741_v13  ;;  %v745_v23 = vadd.f32 %v1574_v5, %v487_v14  ;;  %v489_v24 = vmul.f32 %v1569_v1, %v231_v8  ;;  %v490_v25 = vmul.f32 %v1569_v1, %v232_v9  ;;  %v253_v8 = vld [vmem:[%s1562_s7 + $0x370] sm:$0xff]  ;;  %v254_v13 = vld [vmem:[%s1562_s7 + $0x378] sm:$0xff] }
  0x76   : > { %v491_v26 = vmul.f32 %v1569_v1, %v233_v10  ;;  %998 = vst [vmem:[%s1603_s22 + $0x298] sm:$0xff] %v742_v18  ;;  %999 = vst [vmem:[%s1603_s22 + $0x2a0] sm:$0xff] %v743_v19  ;;  %v746_v28 = vadd.f32 %v1574_v5, %v488_v21  ;;  %v492_v29 = vmul.f32 %v1569_v1, %v234_v15  ;;  %v255_v18 = vld [vmem:[%s1562_s7 + $0x380] sm:$0xff]  ;;  %v256_v19 = vld [vmem:[%s1562_s7 + $0x388] sm:$0xff] }
  0x77   : > { %1000 = vst [vmem:[%s1603_s22 + $0x2a8] sm:$0xff] %v744_v20  ;;  %v493_v30 = vmul.f32 %v1569_v1, %v235_v16  ;;  %v494_v31 = vmul.f32 %v1569_v1, %v236_v17  ;;  %1001 = vst [vmem:[%s1603_s22 + $0x2b0] sm:$0xff] %v745_v23  ;;  %v747_v35 = vadd.f32 %v1574_v5, %v489_v24  ;;  %v257_v20 = vld [vmem:[%s1562_s7 + $0x390] sm:$0xff] }
  0x78   : > { %v748_v36 = vadd.f32 %v1574_v5, %v490_v25  ;;  %v749_v37 = vadd.f32 %v1574_v5, %v491_v26  ;;  %v495_v38 = vmul.f32 %v1569_v1, %v237_v22  ;;  %1002 = vst [vmem:[%s1603_s22 + $0x2b8] sm:$0xff] %v746_v28  ;;  %v750_v42 = vadd.f32 %v1574_v5, %v492_v29  ;;  %v258_v25 = vld [vmem:[%s1562_s7 + $0x398] sm:$0xff]  ;;  %v259_v26 = vld [vmem:[%s1562_s7 + $0x3a0] sm:$0xff] }
  0x79   : > { %v751_v43 = vadd.f32 %v1574_v5, %v493_v30  ;;  %v752_v44 = vadd.f32 %v1574_v5, %v494_v31  ;;  %v496_v45 = vmul.f32 %v1569_v1, %v238_v27  ;;  %1003 = vst [vmem:[%s1603_s22 + $0x2c0] sm:$0xff] %v747_v35  ;;  %v497_v48 = vmul.f32 %v1569_v1, %v239_v32  ;;  %v260_v27 = vld [vmem:[%s1562_s7 + $0x3a8] sm:$0xff]  ;;  %v261_v32 = vld [vmem:[%s1562_s7 + $0x3b0] sm:$0xff] }
  0x7a   : > { %1004 = vst [vmem:[%s1603_s22 + $0x2c8] sm:$0xff] %v748_v36  ;;  %1005 = vst [vmem:[%s1603_s22 + $0x2d0] sm:$0xff] %v749_v37  ;;  %v753_v47 = vadd.f32 %v1574_v5, %v495_v38  ;;  %v498_v49 = vmul.f32 %v1569_v1, %v240_v33  ;;  %v499_v50 = vmul.f32 %v1569_v1, %v241_v34  ;;  %v262_v37 = vld [vmem:[%s1562_s7 + $0x3b8] sm:$0xff] }
  0x7b   : > { %1006 = vst [vmem:[%s1603_s22 + $0x2d8] sm:$0xff] %v750_v42  ;;  %1007 = vst [vmem:[%s1603_s22 + $0x2e0] sm:$0xff] %v751_v43  ;;  %v754_v52 = vadd.f32 %v1574_v5, %v496_v45  ;;  %v500_v53 = vmul.f32 %v1569_v1, %v242_v39  ;;  %v501_v54 = vmul.f32 %v1569_v1, %v243_v40  ;;  %v263_v42 = vld [vmem:[%s1562_s7 + $0x3c0] sm:$0xff]  ;;  %v264_v43 = vld [vmem:[%s1562_s7 + $0x3c8] sm:$0xff] }
  0x7c   : > { %1008 = vst [vmem:[%s1603_s22 + $0x2e8] sm:$0xff] %v752_v44  ;;  %v502_v55 = vmul.f32 %v1569_v1, %v244_v41  ;;  %1009 = vst [vmem:[%s1603_s22 + $0x2f0] sm:$0xff] %v753_v47  ;;  %v755_v59 = vadd.f32 %v1574_v5, %v497_v48  ;;  %v756_v60 = vadd.f32 %v1574_v5, %v498_v49  ;;  %v265_v44 = vld [vmem:[%s1562_s7 + $0x3d0] sm:$0xff]  ;;  %v266_v49 = vld [vmem:[%s1562_s7 + $0x3d8] sm:$0xff] }
  0x7d   : > { %v757_v61 = vadd.f32 %v1574_v5, %v499_v50  ;;  %v503_v62 = vmul.f32 %v1569_v1, %v245_v46  ;;  %1010 = vst [vmem:[%s1603_s22 + $0x2f8] sm:$0xff] %v754_v52  ;;  %v758_v3 = vadd.f32 %v1574_v5, %v500_v53  ;;  %v759_v4 = vadd.f32 %v1574_v5, %v501_v54  ;;  %v267_v50 = vld [vmem:[%s1562_s7 + $0x3e0] sm:$0xff] }
  0x7e   : > { %v760_v6 = vadd.f32 %v1574_v5, %v502_v55  ;;  %v504_v7 = vmul.f32 %v1569_v1, %v246_v51  ;;  %1011 = vst [vmem:[%s1603_s22 + $0x300] sm:$0xff] %v755_v59  ;;  %1012 = vst [vmem:[%s1603_s22 + $0x308] sm:$0xff] %v756_v60  ;;  %v505_v10 = vmul.f32 %v1569_v1, %v247_v56  ;;  %v268_v51 = vld [vmem:[%s1562_s7 + $0x3e8] sm:$0xff]  ;;  %v269_v56 = vld [vmem:[%s1562_s7 + $0x3f0] sm:$0xff] }
  0x7f   : > { %1013 = vst [vmem:[%s1603_s22 + $0x310] sm:$0xff] %v757_v61  ;;  %v761_v9 = vadd.f32 %v1574_v5, %v503_v62  ;;  %v506_v11 = vmul.f32 %v1569_v1, %v248_v57  ;;  %v507_v12 = vmul.f32 %v1569_v1, %v249_v58  ;;  %1014 = vst [vmem:[%s1603_s22 + $0x318] sm:$0xff] %v758_v3  ;;  %v270_v61 = vld [vmem:[%s1562_s7 + $0x3f8] sm:$0xff]  ;;  %v271_v3 = vld [vmem:[%s1562_s7 + $0x400] sm:$0xff] }
  0x80   : > { %1015 = vst [vmem:[%s1603_s22 + $0x320] sm:$0xff] %v759_v4  ;;  %1016 = vst [vmem:[%s1603_s22 + $0x328] sm:$0xff] %v760_v6  ;;  %v762_v14 = vadd.f32 %v1574_v5, %v504_v7  ;;  %v508_v15 = vmul.f32 %v1569_v1, %v250_v63  ;;  %v509_v16 = vmul.f32 %v1569_v1, %v251_v0  ;;  %v272_v4 = vld [vmem:[%s1562_s7 + $0x408] sm:$0xff]  ;;  %v273_v6 = vld [vmem:[%s1562_s7 + $0x410] sm:$0xff] }
  0x81   : > { %v510_v17 = vmul.f32 %v1569_v1, %v252_v2  ;;  %1017 = vst [vmem:[%s1603_s22 + $0x330] sm:$0xff] %v761_v9  ;;  %v763_v21 = vadd.f32 %v1574_v5, %v505_v10  ;;  %v764_v22 = vadd.f32 %v1574_v5, %v506_v11  ;;  %v765_v23 = vadd.f32 %v1574_v5, %v507_v12  ;;  %v274_v11 = vld [vmem:[%s1562_s7 + $0x418] sm:$0xff]  ;;  %v275_v12 = vld [vmem:[%s1562_s7 + $0x420] sm:$0xff] }
  0x82   : > { %v511_v24 = vmul.f32 %v1569_v1, %v253_v8  ;;  %1018 = vst [vmem:[%s1603_s22 + $0x338] sm:$0xff] %v762_v14  ;;  %v766_v28 = vadd.f32 %v1574_v5, %v508_v15  ;;  %v767_v29 = vadd.f32 %v1574_v5, %v509_v16  ;;  %v512_v31 = vmul.f32 %v1569_v1, %v254_v13  ;;  %v276_v13 = vld [vmem:[%s1562_s7 + $0x428] sm:$0xff] }
  0x83   : > { %v768_v30 = vadd.f32 %v1574_v5, %v510_v17  ;;  %1019 = vst [vmem:[%s1603_s22 + $0x340] sm:$0xff] %v763_v21  ;;  %1020 = vst [vmem:[%s1603_s22 + $0x348] sm:$0xff] %v764_v22  ;;  %v513_v34 = vmul.f32 %v1569_v1, %v255_v18  ;;  %v514_v35 = vmul.f32 %v1569_v1, %v256_v19  ;;  %v277_v18 = vld [vmem:[%s1562_s7 + $0x430] sm:$0xff] }
  0x84   : > { %1021 = vst [vmem:[%s1603_s22 + $0x350] sm:$0xff] %v765_v23  ;;  %v769_v33 = vadd.f32 %v1574_v5, %v511_v24  ;;  %v515_v36 = vmul.f32 %v1569_v1, %v257_v20  ;;  %1022 = vst [vmem:[%s1603_s22 + $0x358] sm:$0xff] %v766_v28  ;;  %v770_v38 = vadd.f32 %v1574_v5, %v512_v31  ;;  %v278_v23 = vld [vmem:[%s1562_s7 + $0x438] sm:$0xff]  ;;  %v279_v28 = vld [vmem:[%s1562_s7 + $0x440] sm:$0xff] }
  0x85   : > { %1023 = vst [vmem:[%s1603_s22 + $0x360] sm:$0xff] %v767_v29  ;;  %1024 = vst [vmem:[%s1603_s22 + $0x368] sm:$0xff] %v768_v30  ;;  %v516_v39 = vmul.f32 %v1569_v1, %v258_v25  ;;  %v517_v40 = vmul.f32 %v1569_v1, %v259_v26  ;;  %v518_v41 = vmul.f32 %v1569_v1, %v260_v27  ;;  %v280_v29 = vld [vmem:[%s1562_s7 + $0x448] sm:$0xff]  ;;  %v281_v30 = vld [vmem:[%s1562_s7 + $0x450] sm:$0xff] }
  0x86   : > { %1025 = vst [vmem:[%s1603_s22 + $0x370] sm:$0xff] %v769_v33  ;;  %v771_v45 = vadd.f32 %v1574_v5, %v513_v34  ;;  %v772_v46 = vadd.f32 %v1574_v5, %v514_v35  ;;  %v773_v47 = vadd.f32 %v1574_v5, %v515_v36  ;;  %v519_v48 = vmul.f32 %v1569_v1, %v261_v32  ;;  %v282_v35 = vld [vmem:[%s1562_s7 + $0x458] sm:$0xff]  ;;  %v283_v36 = vld [vmem:[%s1562_s7 + $0x460] sm:$0xff] }
  0x87   : > { %1026 = vst [vmem:[%s1603_s22 + $0x378] sm:$0xff] %v770_v38  ;;  %v774_v52 = vadd.f32 %v1574_v5, %v516_v39  ;;  %v775_v53 = vadd.f32 %v1574_v5, %v517_v40  ;;  %v776_v54 = vadd.f32 %v1574_v5, %v518_v41  ;;  %v520_v55 = vmul.f32 %v1569_v1, %v262_v37  ;;  %v284_v37 = vld [vmem:[%s1562_s7 + $0x468] sm:$0xff] }
  0x88   : > { %1027 = vst [vmem:[%s1603_s22 + $0x380] sm:$0xff] %v771_v45  ;;  %1028 = vst [vmem:[%s1603_s22 + $0x388] sm:$0xff] %v772_v46  ;;  %v777_v57 = vadd.f32 %v1574_v5, %v519_v48  ;;  %v521_v58 = vmul.f32 %v1569_v1, %v263_v42  ;;  %v522_v59 = vmul.f32 %v1569_v1, %v264_v43  ;;  %v285_v42 = vld [vmem:[%s1562_s7 + $0x470] sm:$0xff] }
  0x89   : > { %1029 = vst [vmem:[%s1603_s22 + $0x390] sm:$0xff] %v773_v47  ;;  %v523_v60 = vmul.f32 %v1569_v1, %v265_v44  ;;  %1030 = vst [vmem:[%s1603_s22 + $0x398] sm:$0xff] %v774_v52  ;;  %v778_v62 = vadd.f32 %v1574_v5, %v520_v55  ;;  %v524_v63 = vmul.f32 %v1569_v1, %v266_v49  ;;  %v286_v47 = vld [vmem:[%s1562_s7 + $0x478] sm:$0xff]  ;;  %v287_v52 = vld [vmem:[%s1562_s7 + $0x480] sm:$0xff] }
  0x8a   : > { %1031 = vst [vmem:[%s1603_s22 + $0x3a0] sm:$0xff] %v775_v53  ;;  %1032 = vst [vmem:[%s1603_s22 + $0x3a8] sm:$0xff] %v776_v54  ;;  %v525_v0 = vmul.f32 %v1569_v1, %v267_v50  ;;  %v526_v2 = vmul.f32 %v1569_v1, %v268_v51  ;;  %v779_v7 = vadd.f32 %v1574_v5, %v521_v58  ;;  %v288_v53 = vld [vmem:[%s1562_s7 + $0x488] sm:$0xff]  ;;  %v289_v54 = vld [vmem:[%s1562_s7 + $0x490] sm:$0xff] }
  0x8b   : > { %1033 = vst [vmem:[%s1603_s22 + $0x3b0] sm:$0xff] %v777_v57  ;;  %v780_v8 = vadd.f32 %v1574_v5, %v522_v59  ;;  %v781_v9 = vadd.f32 %v1574_v5, %v523_v60  ;;  %v527_v10 = vmul.f32 %v1569_v1, %v269_v56  ;;  %1034 = vst [vmem:[%s1603_s22 + $0x3b8] sm:$0xff] %v778_v62  ;;  %v290_v59 = vld [vmem:[%s1562_s7 + $0x498] sm:$0xff]  ;;  %v291_v60 = vld [vmem:[%s1562_s7 + $0x4a0] sm:$0xff] }
  0x8c   : > { %v782_v14 = vadd.f32 %v1574_v5, %v524_v63  ;;  %v783_v15 = vadd.f32 %v1574_v5, %v525_v0  ;;  %v784_v16 = vadd.f32 %v1574_v5, %v526_v2  ;;  %v528_v17 = vmul.f32 %v1569_v1, %v270_v61  ;;  %1035 = vst [vmem:[%s1603_s22 + $0x3c0] sm:$0xff] %v779_v7  ;;  %v292_v61 = vld [vmem:[%s1562_s7 + $0x4a8] sm:$0xff] }
  0x8d   : > { %1036 = vst [vmem:[%s1603_s22 + $0x3c8] sm:$0xff] %v780_v8  ;;  %1037 = vst [vmem:[%s1603_s22 + $0x3d0] sm:$0xff] %v781_v9  ;;  %v785_v19 = vadd.f32 %v1574_v5, %v527_v10  ;;  %v529_v20 = vmul.f32 %v1569_v1, %v271_v3  ;;  %v530_v21 = vmul.f32 %v1569_v1, %v272_v4  ;;  %v293_v3 = vld [vmem:[%s1562_s7 + $0x4b0] sm:$0xff]  ;;  %v294_v9 = vld [vmem:[%s1562_s7 + $0x4b8] sm:$0xff] }
  0x8e   : > { %v531_v22 = vmul.f32 %v1569_v1, %v273_v6  ;;  %1038 = vst [vmem:[%s1603_s22 + $0x3d8] sm:$0xff] %v782_v14  ;;  %1039 = vst [vmem:[%s1603_s22 + $0x3e0] sm:$0xff] %v783_v15  ;;  %v786_v24 = vadd.f32 %v1574_v5, %v528_v17  ;;  %v532_v25 = vmul.f32 %v1569_v1, %v274_v11  ;;  %v295_v14 = vld [vmem:[%s1562_s7 + $0x4c0] sm:$0xff]  ;;  %v296_v15 = vld [vmem:[%s1562_s7 + $0x4c8] sm:$0xff] }
  0x8f   : > { %1040 = vst [vmem:[%s1603_s22 + $0x3e8] sm:$0xff] %v784_v16  ;;  %v533_v26 = vmul.f32 %v1569_v1, %v275_v12  ;;  %v534_v27 = vmul.f32 %v1569_v1, %v276_v13  ;;  %1041 = vst [vmem:[%s1603_s22 + $0x3f0] sm:$0xff] %v785_v19  ;;  %v787_v31 = vadd.f32 %v1574_v5, %v529_v20  ;;  %v297_v16 = vld [vmem:[%s1562_s7 + $0x4d0] sm:$0xff] }
  0x90   : > { %v788_v32 = vadd.f32 %v1574_v5, %v530_v21  ;;  %v789_v33 = vadd.f32 %v1574_v5, %v531_v22  ;;  %v535_v34 = vmul.f32 %v1569_v1, %v277_v18  ;;  %1042 = vst [vmem:[%s1603_s22 + $0x3f8] sm:$0xff] %v786_v24  ;;  %v790_v38 = vadd.f32 %v1574_v5, %v532_v25  ;;  %v298_v21 = vld [vmem:[%s1562_s7 + $0x4d8] sm:$0xff]  ;;  %v299_v22 = vld [vmem:[%s1562_s7 + $0x4e0] sm:$0xff] }
  0x91   : > { %v791_v39 = vadd.f32 %v1574_v5, %v533_v26  ;;  %v792_v40 = vadd.f32 %v1574_v5, %v534_v27  ;;  %v536_v41 = vmul.f32 %v1569_v1, %v278_v23  ;;  %1043 = vst [vmem:[%s1603_s22 + $0x400] sm:$0xff] %v787_v31  ;;  %v537_v44 = vmul.f32 %v1569_v1, %v279_v28  ;;  %v300_v23 = vld [vmem:[%s1562_s7 + $0x4e8] sm:$0xff]  ;;  %v301_v28 = vld [vmem:[%s1562_s7 + $0x4f0] sm:$0xff] }
  0x92   : > { %1044 = vst [vmem:[%s1603_s22 + $0x408] sm:$0xff] %v788_v32  ;;  %1045 = vst [vmem:[%s1603_s22 + $0x410] sm:$0xff] %v789_v33  ;;  %v793_v43 = vadd.f32 %v1574_v5, %v535_v34  ;;  %v538_v45 = vmul.f32 %v1569_v1, %v280_v29  ;;  %v539_v46 = vmul.f32 %v1569_v1, %v281_v30  ;;  %v302_v33 = vld [vmem:[%s1562_s7 + $0x4f8] sm:$0xff] }
  0x93   : > { %1046 = vst [vmem:[%s1603_s22 + $0x418] sm:$0xff] %v790_v38  ;;  %1047 = vst [vmem:[%s1603_s22 + $0x420] sm:$0xff] %v791_v39  ;;  %v794_v48 = vadd.f32 %v1574_v5, %v536_v41  ;;  %v540_v49 = vmul.f32 %v1569_v1, %v282_v35  ;;  %v541_v50 = vmul.f32 %v1569_v1, %v283_v36  ;;  %v303_v38 = vld [vmem:[%s1562_s7 + $0x500] sm:$0xff]  ;;  %v304_v39 = vld [vmem:[%s1562_s7 + $0x508] sm:$0xff] }
  0x94   : > { %1048 = vst [vmem:[%s1603_s22 + $0x428] sm:$0xff] %v792_v40  ;;  %v542_v51 = vmul.f32 %v1569_v1, %v284_v37  ;;  %1049 = vst [vmem:[%s1603_s22 + $0x430] sm:$0xff] %v793_v43  ;;  %v795_v55 = vadd.f32 %v1574_v5, %v537_v44  ;;  %v796_v56 = vadd.f32 %v1574_v5, %v538_v45  ;;  %v305_v40 = vld [vmem:[%s1562_s7 + $0x510] sm:$0xff]  ;;  %v306_v45 = vld [vmem:[%s1562_s7 + $0x518] sm:$0xff] }
  0x95   : > { %v797_v57 = vadd.f32 %v1574_v5, %v539_v46  ;;  %v543_v58 = vmul.f32 %v1569_v1, %v285_v42  ;;  %1050 = vst [vmem:[%s1603_s22 + $0x438] sm:$0xff] %v794_v48  ;;  %v798_v62 = vadd.f32 %v1574_v5, %v540_v49  ;;  %v799_v63 = vadd.f32 %v1574_v5, %v541_v50  ;;  %v307_v46 = vld [vmem:[%s1562_s7 + $0x520] sm:$0xff] }
  0x96   : > { %v800_v0 = vadd.f32 %v1574_v5, %v542_v51  ;;  %v544_v2 = vmul.f32 %v1569_v1, %v286_v47  ;;  %1051 = vst [vmem:[%s1603_s22 + $0x440] sm:$0xff] %v795_v55  ;;  %1052 = vst [vmem:[%s1603_s22 + $0x448] sm:$0xff] %v796_v56  ;;  %v545_v6 = vmul.f32 %v1569_v1, %v287_v52  ;;  %v308_v47 = vld [vmem:[%s1562_s7 + $0x528] sm:$0xff]  ;;  %v309_v52 = vld [vmem:[%s1562_s7 + $0x530] sm:$0xff] }
  0x97   : > { %1053 = vst [vmem:[%s1603_s22 + $0x450] sm:$0xff] %v797_v57  ;;  %v801_v4 = vadd.f32 %v1574_v5, %v543_v58  ;;  %v546_v7 = vmul.f32 %v1569_v1, %v288_v53  ;;  %v547_v8 = vmul.f32 %v1569_v1, %v289_v54  ;;  %1054 = vst [vmem:[%s1603_s22 + $0x458] sm:$0xff] %v798_v62  ;;  %v310_v57 = vld [vmem:[%s1562_s7 + $0x538] sm:$0xff]  ;;  %v311_v62 = vld [vmem:[%s1562_s7 + $0x540] sm:$0xff] }
  0x98   : > { %1055 = vst [vmem:[%s1603_s22 + $0x460] sm:$0xff] %v799_v63  ;;  %1056 = vst [vmem:[%s1603_s22 + $0x468] sm:$0xff] %v800_v0  ;;  %v802_v10 = vadd.f32 %v1574_v5, %v544_v2  ;;  %v548_v11 = vmul.f32 %v1569_v1, %v290_v59  ;;  %v549_v12 = vmul.f32 %v1569_v1, %v291_v60  ;;  %v312_v63 = vld [vmem:[%s1562_s7 + $0x548] sm:$0xff]  ;;  %v313_v0 = vld [vmem:[%s1562_s7 + $0x550] sm:$0xff] }
  0x99   : > { %v550_v13 = vmul.f32 %v1569_v1, %v292_v61  ;;  %1057 = vst [vmem:[%s1603_s22 + $0x470] sm:$0xff] %v801_v4  ;;  %v803_v17 = vadd.f32 %v1574_v5, %v545_v6  ;;  %v804_v18 = vadd.f32 %v1574_v5, %v546_v7  ;;  %v805_v19 = vadd.f32 %v1574_v5, %v547_v8  ;;  %v314_v7 = vld [vmem:[%s1562_s7 + $0x558] sm:$0xff]  ;;  %v315_v8 = vld [vmem:[%s1562_s7 + $0x560] sm:$0xff] }
  0x9a   : > { %v551_v20 = vmul.f32 %v1569_v1, %v293_v3  ;;  %1058 = vst [vmem:[%s1603_s22 + $0x478] sm:$0xff] %v802_v10  ;;  %v806_v24 = vadd.f32 %v1574_v5, %v548_v11  ;;  %v807_v25 = vadd.f32 %v1574_v5, %v549_v12  ;;  %v552_v27 = vmul.f32 %v1569_v1, %v294_v9  ;;  %v316_v9 = vld [vmem:[%s1562_s7 + $0x568] sm:$0xff] }
  0x9b   : > { %v808_v26 = vadd.f32 %v1574_v5, %v550_v13  ;;  %1059 = vst [vmem:[%s1603_s22 + $0x480] sm:$0xff] %v803_v17  ;;  %1060 = vst [vmem:[%s1603_s22 + $0x488] sm:$0xff] %v804_v18  ;;  %v553_v30 = vmul.f32 %v1569_v1, %v295_v14  ;;  %v554_v31 = vmul.f32 %v1569_v1, %v296_v15  ;;  %v317_v14 = vld [vmem:[%s1562_s7 + $0x570] sm:$0xff] }
  0x9c   : > { %1061 = vst [vmem:[%s1603_s22 + $0x490] sm:$0xff] %v805_v19  ;;  %v809_v29 = vadd.f32 %v1574_v5, %v551_v20  ;;  %v555_v32 = vmul.f32 %v1569_v1, %v297_v16  ;;  %1062 = vst [vmem:[%s1603_s22 + $0x498] sm:$0xff] %v806_v24  ;;  %v810_v34 = vadd.f32 %v1574_v5, %v552_v27  ;;  %v318_v19 = vld [vmem:[%s1562_s7 + $0x578] sm:$0xff]  ;;  %v319_v24 = vld [vmem:[%s1562_s7 + $0x580] sm:$0xff] }
  0x9d   : > { %1063 = vst [vmem:[%s1603_s22 + $0x4a0] sm:$0xff] %v807_v25  ;;  %1064 = vst [vmem:[%s1603_s22 + $0x4a8] sm:$0xff] %v808_v26  ;;  %v556_v35 = vmul.f32 %v1569_v1, %v298_v21  ;;  %v557_v36 = vmul.f32 %v1569_v1, %v299_v22  ;;  %v558_v37 = vmul.f32 %v1569_v1, %v300_v23  ;;  %v320_v25 = vld [vmem:[%s1562_s7 + $0x588] sm:$0xff]  ;;  %v321_v26 = vld [vmem:[%s1562_s7 + $0x590] sm:$0xff] }
  0x9e   : > { %1065 = vst [vmem:[%s1603_s22 + $0x4b0] sm:$0xff] %v809_v29  ;;  %v811_v41 = vadd.f32 %v1574_v5, %v553_v30  ;;  %v812_v42 = vadd.f32 %v1574_v5, %v554_v31  ;;  %v813_v43 = vadd.f32 %v1574_v5, %v555_v32  ;;  %v559_v44 = vmul.f32 %v1569_v1, %v301_v28  ;;  %v322_v31 = vld [vmem:[%s1562_s7 + $0x598] sm:$0xff]  ;;  %v323_v32 = vld [vmem:[%s1562_s7 + $0x5a0] sm:$0xff] }
  0x9f   : > { %1066 = vst [vmem:[%s1603_s22 + $0x4b8] sm:$0xff] %v810_v34  ;;  %v814_v48 = vadd.f32 %v1574_v5, %v556_v35  ;;  %v815_v49 = vadd.f32 %v1574_v5, %v557_v36  ;;  %v816_v50 = vadd.f32 %v1574_v5, %v558_v37  ;;  %v560_v51 = vmul.f32 %v1569_v1, %v302_v33  ;;  %v324_v33 = vld [vmem:[%s1562_s7 + $0x5a8] sm:$0xff] }
  0xa0   : > { %1067 = vst [vmem:[%s1603_s22 + $0x4c0] sm:$0xff] %v811_v41  ;;  %1068 = vst [vmem:[%s1603_s22 + $0x4c8] sm:$0xff] %v812_v42  ;;  %v817_v53 = vadd.f32 %v1574_v5, %v559_v44  ;;  %v561_v54 = vmul.f32 %v1569_v1, %v303_v38  ;;  %v562_v55 = vmul.f32 %v1569_v1, %v304_v39  ;;  %v325_v38 = vld [vmem:[%s1562_s7 + $0x5b0] sm:$0xff] }
  0xa1   : > { %1069 = vst [vmem:[%s1603_s22 + $0x4d0] sm:$0xff] %v813_v43  ;;  %v563_v56 = vmul.f32 %v1569_v1, %v305_v40  ;;  %1070 = vst [vmem:[%s1603_s22 + $0x4d8] sm:$0xff] %v814_v48  ;;  %v818_v58 = vadd.f32 %v1574_v5, %v560_v51  ;;  %v564_v59 = vmul.f32 %v1569_v1, %v306_v45  ;;  %v326_v43 = vld [vmem:[%s1562_s7 + $0x5b8] sm:$0xff]  ;;  %v327_v48 = vld [vmem:[%s1562_s7 + $0x5c0] sm:$0xff] }
  0xa2   : > { %1071 = vst [vmem:[%s1603_s22 + $0x4e0] sm:$0xff] %v815_v49  ;;  %1072 = vst [vmem:[%s1603_s22 + $0x4e8] sm:$0xff] %v816_v50  ;;  %v565_v60 = vmul.f32 %v1569_v1, %v307_v46  ;;  %v566_v61 = vmul.f32 %v1569_v1, %v308_v47  ;;  %v819_v2 = vadd.f32 %v1574_v5, %v561_v54  ;;  %v328_v49 = vld [vmem:[%s1562_s7 + $0x5c8] sm:$0xff]  ;;  %v329_v50 = vld [vmem:[%s1562_s7 + $0x5d0] sm:$0xff] }
  0xa3   : > { %1073 = vst [vmem:[%s1603_s22 + $0x4f0] sm:$0xff] %v817_v53  ;;  %v820_v3 = vadd.f32 %v1574_v5, %v562_v55  ;;  %v821_v4 = vadd.f32 %v1574_v5, %v563_v56  ;;  %v567_v6 = vmul.f32 %v1569_v1, %v309_v52  ;;  %1074 = vst [vmem:[%s1603_s22 + $0x4f8] sm:$0xff] %v818_v58  ;;  %v330_v55 = vld [vmem:[%s1562_s7 + $0x5d8] sm:$0xff]  ;;  %v331_v56 = vld [vmem:[%s1562_s7 + $0x5e0] sm:$0xff] }
  0xa4   : > { %v822_v10 = vadd.f32 %v1574_v5, %v564_v59  ;;  %v823_v11 = vadd.f32 %v1574_v5, %v565_v60  ;;  %v824_v12 = vadd.f32 %v1574_v5, %v566_v61  ;;  %v568_v13 = vmul.f32 %v1569_v1, %v310_v57  ;;  %1075 = vst [vmem:[%s1603_s22 + $0x500] sm:$0xff] %v819_v2  ;;  %v332_v57 = vld [vmem:[%s1562_s7 + $0x5e8] sm:$0xff] }
  0xa5   : > { %1076 = vst [vmem:[%s1603_s22 + $0x508] sm:$0xff] %v820_v3  ;;  %1077 = vst [vmem:[%s1603_s22 + $0x510] sm:$0xff] %v821_v4  ;;  %v825_v15 = vadd.f32 %v1574_v5, %v567_v6  ;;  %v569_v16 = vmul.f32 %v1569_v1, %v311_v62  ;;  %v570_v17 = vmul.f32 %v1569_v1, %v312_v63  ;;  %v333_v62 = vld [vmem:[%s1562_s7 + $0x5f0] sm:$0xff]  ;;  %v334_v4 = vld [vmem:[%s1562_s7 + $0x5f8] sm:$0xff] }
  0xa6   : > { %v571_v18 = vmul.f32 %v1569_v1, %v313_v0  ;;  %1078 = vst [vmem:[%s1603_s22 + $0x518] sm:$0xff] %v822_v10  ;;  %1079 = vst [vmem:[%s1603_s22 + $0x520] sm:$0xff] %v823_v11  ;;  %v826_v20 = vadd.f32 %v1574_v5, %v568_v13  ;;  %v572_v21 = vmul.f32 %v1569_v1, %v314_v7  ;;  %v335_v10 = vld [vmem:[%s1562_s7 + $0x600] sm:$0xff]  ;;  %v336_v11 = vld [vmem:[%s1562_s7 + $0x608] sm:$0xff] }
  0xa7   : > { %1080 = vst [vmem:[%s1603_s22 + $0x528] sm:$0xff] %v824_v12  ;;  %v573_v22 = vmul.f32 %v1569_v1, %v315_v8  ;;  %v574_v23 = vmul.f32 %v1569_v1, %v316_v9  ;;  %1081 = vst [vmem:[%s1603_s22 + $0x530] sm:$0xff] %v825_v15  ;;  %v827_v27 = vadd.f32 %v1574_v5, %v569_v16  ;;  %v337_v12 = vld [vmem:[%s1562_s7 + $0x610] sm:$0xff] }
  0xa8   : > { %v828_v28 = vadd.f32 %v1574_v5, %v570_v17  ;;  %v829_v29 = vadd.f32 %v1574_v5, %v571_v18  ;;  %v575_v30 = vmul.f32 %v1569_v1, %v317_v14  ;;  %1082 = vst [vmem:[%s1603_s22 + $0x538] sm:$0xff] %v826_v20  ;;  %v830_v34 = vadd.f32 %v1574_v5, %v572_v21  ;;  %v338_v17 = vld [vmem:[%s1562_s7 + $0x618] sm:$0xff]  ;;  %v339_v18 = vld [vmem:[%s1562_s7 + $0x620] sm:$0xff] }
  0xa9   : > { %v831_v35 = vadd.f32 %v1574_v5, %v573_v22  ;;  %v832_v36 = vadd.f32 %v1574_v5, %v574_v23  ;;  %v576_v37 = vmul.f32 %v1569_v1, %v318_v19  ;;  %1083 = vst [vmem:[%s1603_s22 + $0x540] sm:$0xff] %v827_v27  ;;  %v577_v40 = vmul.f32 %v1569_v1, %v319_v24  ;;  %v340_v19 = vld [vmem:[%s1562_s7 + $0x628] sm:$0xff]  ;;  %v341_v24 = vld [vmem:[%s1562_s7 + $0x630] sm:$0xff] }
  0xaa   : > { %1084 = vst [vmem:[%s1603_s22 + $0x548] sm:$0xff] %v828_v28  ;;  %1085 = vst [vmem:[%s1603_s22 + $0x550] sm:$0xff] %v829_v29  ;;  %v833_v39 = vadd.f32 %v1574_v5, %v575_v30  ;;  %v578_v41 = vmul.f32 %v1569_v1, %v320_v25  ;;  %v579_v42 = vmul.f32 %v1569_v1, %v321_v26  ;;  %v342_v29 = vld [vmem:[%s1562_s7 + $0x638] sm:$0xff] }
  0xab   : > { %1086 = vst [vmem:[%s1603_s22 + $0x558] sm:$0xff] %v830_v34  ;;  %1087 = vst [vmem:[%s1603_s22 + $0x560] sm:$0xff] %v831_v35  ;;  %v834_v44 = vadd.f32 %v1574_v5, %v576_v37  ;;  %v580_v45 = vmul.f32 %v1569_v1, %v322_v31  ;;  %v581_v46 = vmul.f32 %v1569_v1, %v323_v32  ;;  %v343_v34 = vld [vmem:[%s1562_s7 + $0x640] sm:$0xff]  ;;  %v344_v35 = vld [vmem:[%s1562_s7 + $0x648] sm:$0xff] }
  0xac   : > { %1088 = vst [vmem:[%s1603_s22 + $0x568] sm:$0xff] %v832_v36  ;;  %v582_v47 = vmul.f32 %v1569_v1, %v324_v33  ;;  %1089 = vst [vmem:[%s1603_s22 + $0x570] sm:$0xff] %v833_v39  ;;  %v835_v51 = vadd.f32 %v1574_v5, %v577_v40  ;;  %v836_v52 = vadd.f32 %v1574_v5, %v578_v41  ;;  %v345_v36 = vld [vmem:[%s1562_s7 + $0x650] sm:$0xff]  ;;  %v346_v41 = vld [vmem:[%s1562_s7 + $0x658] sm:$0xff] }
  0xad   : > { %v837_v53 = vadd.f32 %v1574_v5, %v579_v42  ;;  %v583_v54 = vmul.f32 %v1569_v1, %v325_v38  ;;  %1090 = vst [vmem:[%s1603_s22 + $0x578] sm:$0xff] %v834_v44  ;;  %v838_v58 = vadd.f32 %v1574_v5, %v580_v45  ;;  %v839_v59 = vadd.f32 %v1574_v5, %v581_v46  ;;  %v347_v42 = vld [vmem:[%s1562_s7 + $0x660] sm:$0xff] }
  0xae   : > { %v840_v60 = vadd.f32 %v1574_v5, %v582_v47  ;;  %v584_v61 = vmul.f32 %v1569_v1, %v326_v43  ;;  %1091 = vst [vmem:[%s1603_s22 + $0x580] sm:$0xff] %v835_v51  ;;  %1092 = vst [vmem:[%s1603_s22 + $0x588] sm:$0xff] %v836_v52  ;;  %v585_v0 = vmul.f32 %v1569_v1, %v327_v48  ;;  %v348_v43 = vld [vmem:[%s1562_s7 + $0x668] sm:$0xff]  ;;  %v349_v48 = vld [vmem:[%s1562_s7 + $0x670] sm:$0xff] }
  0xaf   : > { %1093 = vst [vmem:[%s1603_s22 + $0x590] sm:$0xff] %v837_v53  ;;  %v841_v63 = vadd.f32 %v1574_v5, %v583_v54  ;;  %v586_v2 = vmul.f32 %v1569_v1, %v328_v49  ;;  %v587_v3 = vmul.f32 %v1569_v1, %v329_v50  ;;  %1094 = vst [vmem:[%s1603_s22 + $0x598] sm:$0xff] %v838_v58  ;;  %v350_v53 = vld [vmem:[%s1562_s7 + $0x678] sm:$0xff]  ;;  %v351_v58 = vld [vmem:[%s1562_s7 + $0x680] sm:$0xff] }
  0xb0   : > { %1095 = vst [vmem:[%s1603_s22 + $0x5a0] sm:$0xff] %v839_v59  ;;  %1096 = vst [vmem:[%s1603_s22 + $0x5a8] sm:$0xff] %v840_v60  ;;  %v842_v6 = vadd.f32 %v1574_v5, %v584_v61  ;;  %v588_v7 = vmul.f32 %v1569_v1, %v330_v55  ;;  %v589_v8 = vmul.f32 %v1569_v1, %v331_v56  ;;  %v352_v59 = vld [vmem:[%s1562_s7 + $0x688] sm:$0xff]  ;;  %v353_v60 = vld [vmem:[%s1562_s7 + $0x690] sm:$0xff] }
  0xb1   : > { %v590_v9 = vmul.f32 %v1569_v1, %v332_v57  ;;  %1097 = vst [vmem:[%s1603_s22 + $0x5b0] sm:$0xff] %v841_v63  ;;  %v843_v13 = vadd.f32 %v1574_v5, %v585_v0  ;;  %v844_v14 = vadd.f32 %v1574_v5, %v586_v2  ;;  %v845_v15 = vadd.f32 %v1574_v5, %v587_v3  ;;  %v354_v2 = vld [vmem:[%s1562_s7 + $0x698] sm:$0xff]  ;;  %v355_v3 = vld [vmem:[%s1562_s7 + $0x6a0] sm:$0xff] }
  0xb2   : > { %v591_v16 = vmul.f32 %v1569_v1, %v333_v62  ;;  %1098 = vst [vmem:[%s1603_s22 + $0x5b8] sm:$0xff] %v842_v6  ;;  %v846_v20 = vadd.f32 %v1574_v5, %v588_v7  ;;  %v847_v21 = vadd.f32 %v1574_v5, %v589_v8  ;;  %v592_v23 = vmul.f32 %v1569_v1, %v334_v4  ;;  %v356_v4 = vld [vmem:[%s1562_s7 + $0x6a8] sm:$0xff] }
  0xb3   : > { %v848_v22 = vadd.f32 %v1574_v5, %v590_v9  ;;  %1099 = vst [vmem:[%s1603_s22 + $0x5c0] sm:$0xff] %v843_v13  ;;  %1100 = vst [vmem:[%s1603_s22 + $0x5c8] sm:$0xff] %v844_v14  ;;  %v593_v26 = vmul.f32 %v1569_v1, %v335_v10  ;;  %v594_v27 = vmul.f32 %v1569_v1, %v336_v11  ;;  %v357_v10 = vld [vmem:[%s1562_s7 + $0x6b0] sm:$0xff] }
  0xb4   : > { %1101 = vst [vmem:[%s1603_s22 + $0x5d0] sm:$0xff] %v845_v15  ;;  %v849_v25 = vadd.f32 %v1574_v5, %v591_v16  ;;  %v595_v28 = vmul.f32 %v1569_v1, %v337_v12  ;;  %1102 = vst [vmem:[%s1603_s22 + $0x5d8] sm:$0xff] %v846_v20  ;;  %v850_v30 = vadd.f32 %v1574_v5, %v592_v23  ;;  %v358_v15 = vld [vmem:[%s1562_s7 + $0x6b8] sm:$0xff]  ;;  %v359_v20 = vld [vmem:[%s1562_s7 + $0x6c0] sm:$0xff] }
  0xb5   : > { %1103 = vst [vmem:[%s1603_s22 + $0x5e0] sm:$0xff] %v847_v21  ;;  %1104 = vst [vmem:[%s1603_s22 + $0x5e8] sm:$0xff] %v848_v22  ;;  %v596_v31 = vmul.f32 %v1569_v1, %v338_v17  ;;  %v597_v32 = vmul.f32 %v1569_v1, %v339_v18  ;;  %v598_v33 = vmul.f32 %v1569_v1, %v340_v19  ;;  %v360_v21 = vld [vmem:[%s1562_s7 + $0x6c8] sm:$0xff]  ;;  %v361_v22 = vld [vmem:[%s1562_s7 + $0x6d0] sm:$0xff] }
  0xb6   : > { %1105 = vst [vmem:[%s1603_s22 + $0x5f0] sm:$0xff] %v849_v25  ;;  %v851_v37 = vadd.f32 %v1574_v5, %v593_v26  ;;  %v852_v38 = vadd.f32 %v1574_v5, %v594_v27  ;;  %v853_v39 = vadd.f32 %v1574_v5, %v595_v28  ;;  %v599_v40 = vmul.f32 %v1569_v1, %v341_v24  ;;  %v362_v27 = vld [vmem:[%s1562_s7 + $0x6d8] sm:$0xff]  ;;  %v363_v28 = vld [vmem:[%s1562_s7 + $0x6e0] sm:$0xff] }
  0xb7   : > { %1106 = vst [vmem:[%s1603_s22 + $0x5f8] sm:$0xff] %v850_v30  ;;  %v854_v44 = vadd.f32 %v1574_v5, %v596_v31  ;;  %v855_v45 = vadd.f32 %v1574_v5, %v597_v32  ;;  %v856_v46 = vadd.f32 %v1574_v5, %v598_v33  ;;  %v600_v47 = vmul.f32 %v1569_v1, %v342_v29  ;;  %v364_v29 = vld [vmem:[%s1562_s7 + $0x6e8] sm:$0xff] }
  0xb8   : > { %1107 = vst [vmem:[%s1603_s22 + $0x600] sm:$0xff] %v851_v37  ;;  %1108 = vst [vmem:[%s1603_s22 + $0x608] sm:$0xff] %v852_v38  ;;  %v857_v49 = vadd.f32 %v1574_v5, %v599_v40  ;;  %v601_v50 = vmul.f32 %v1569_v1, %v343_v34  ;;  %v602_v51 = vmul.f32 %v1569_v1, %v344_v35  ;;  %v365_v34 = vld [vmem:[%s1562_s7 + $0x6f0] sm:$0xff] }
  0xb9   : > { %1109 = vst [vmem:[%s1603_s22 + $0x610] sm:$0xff] %v853_v39  ;;  %v603_v52 = vmul.f32 %v1569_v1, %v345_v36  ;;  %1110 = vst [vmem:[%s1603_s22 + $0x618] sm:$0xff] %v854_v44  ;;  %v858_v54 = vadd.f32 %v1574_v5, %v600_v47  ;;  %v604_v55 = vmul.f32 %v1569_v1, %v346_v41  ;;  %v366_v39 = vld [vmem:[%s1562_s7 + $0x6f8] sm:$0xff]  ;;  %v367_v44 = vld [vmem:[%s1562_s7 + $0x700] sm:$0xff] }
  0xba   : > { %1111 = vst [vmem:[%s1603_s22 + $0x620] sm:$0xff] %v855_v45  ;;  %1112 = vst [vmem:[%s1603_s22 + $0x628] sm:$0xff] %v856_v46  ;;  %v605_v56 = vmul.f32 %v1569_v1, %v347_v42  ;;  %v606_v57 = vmul.f32 %v1569_v1, %v348_v43  ;;  %v859_v61 = vadd.f32 %v1574_v5, %v601_v50  ;;  %v368_v45 = vld [vmem:[%s1562_s7 + $0x708] sm:$0xff]  ;;  %v369_v46 = vld [vmem:[%s1562_s7 + $0x710] sm:$0xff] }
  0xbb   : > { %1113 = vst [vmem:[%s1603_s22 + $0x630] sm:$0xff] %v857_v49  ;;  %v860_v62 = vadd.f32 %v1574_v5, %v602_v51  ;;  %v861_v63 = vadd.f32 %v1574_v5, %v603_v52  ;;  %v607_v0 = vmul.f32 %v1569_v1, %v349_v48  ;;  %1114 = vst [vmem:[%s1603_s22 + $0x638] sm:$0xff] %v858_v54  ;;  %v370_v51 = vld [vmem:[%s1562_s7 + $0x718] sm:$0xff]  ;;  %v371_v52 = vld [vmem:[%s1562_s7 + $0x720] sm:$0xff] }
  0xbc   : > { %v862_v6 = vadd.f32 %v1574_v5, %v604_v55  ;;  %v863_v7 = vadd.f32 %v1574_v5, %v605_v56  ;;  %v864_v8 = vadd.f32 %v1574_v5, %v606_v57  ;;  %v608_v9 = vmul.f32 %v1569_v1, %v350_v53  ;;  %1115 = vst [vmem:[%s1603_s22 + $0x640] sm:$0xff] %v859_v61  ;;  %v372_v53 = vld [vmem:[%s1562_s7 + $0x728] sm:$0xff] }
  0xbd   : > { %1116 = vst [vmem:[%s1603_s22 + $0x648] sm:$0xff] %v860_v62  ;;  %1117 = vst [vmem:[%s1603_s22 + $0x650] sm:$0xff] %v861_v63  ;;  %v865_v11 = vadd.f32 %v1574_v5, %v607_v0  ;;  %v609_v12 = vmul.f32 %v1569_v1, %v351_v58  ;;  %v610_v13 = vmul.f32 %v1569_v1, %v352_v59  ;;  %v373_v58 = vld [vmem:[%s1562_s7 + $0x730] sm:$0xff]  ;;  %v374_v63 = vld [vmem:[%s1562_s7 + $0x738] sm:$0xff] }
  0xbe   : > { %v611_v14 = vmul.f32 %v1569_v1, %v353_v60  ;;  %1118 = vst [vmem:[%s1603_s22 + $0x658] sm:$0xff] %v862_v6  ;;  %1119 = vst [vmem:[%s1603_s22 + $0x660] sm:$0xff] %v863_v7  ;;  %v866_v16 = vadd.f32 %v1574_v5, %v608_v9  ;;  %v612_v17 = vmul.f32 %v1569_v1, %v354_v2  ;;  %v375_v6 = vld [vmem:[%s1562_s7 + $0x740] sm:$0xff]  ;;  %v376_v7 = vld [vmem:[%s1562_s7 + $0x748] sm:$0xff] }
  0xbf   : > { %1120 = vst [vmem:[%s1603_s22 + $0x668] sm:$0xff] %v864_v8  ;;  %v613_v18 = vmul.f32 %v1569_v1, %v355_v3  ;;  %v614_v19 = vmul.f32 %v1569_v1, %v356_v4  ;;  %1121 = vst [vmem:[%s1603_s22 + $0x670] sm:$0xff] %v865_v11  ;;  %v867_v23 = vadd.f32 %v1574_v5, %v609_v12  ;;  %v377_v8 = vld [vmem:[%s1562_s7 + $0x750] sm:$0xff] }
  0xc0   : > { %v868_v24 = vadd.f32 %v1574_v5, %v610_v13  ;;  %v869_v25 = vadd.f32 %v1574_v5, %v611_v14  ;;  %v615_v26 = vmul.f32 %v1569_v1, %v357_v10  ;;  %1122 = vst [vmem:[%s1603_s22 + $0x678] sm:$0xff] %v866_v16  ;;  %v870_v30 = vadd.f32 %v1574_v5, %v612_v17  ;;  %v378_v13 = vld [vmem:[%s1562_s7 + $0x758] sm:$0xff]  ;;  %v379_v14 = vld [vmem:[%s1562_s7 + $0x760] sm:$0xff] }
  0xc1   : > { %v871_v31 = vadd.f32 %v1574_v5, %v613_v18  ;;  %v872_v32 = vadd.f32 %v1574_v5, %v614_v19  ;;  %v616_v33 = vmul.f32 %v1569_v1, %v358_v15  ;;  %1123 = vst [vmem:[%s1603_s22 + $0x680] sm:$0xff] %v867_v23  ;;  %v617_v36 = vmul.f32 %v1569_v1, %v359_v20  ;;  %v380_v15 = vld [vmem:[%s1562_s7 + $0x768] sm:$0xff]  ;;  %v381_v20 = vld [vmem:[%s1562_s7 + $0x770] sm:$0xff] }
  0xc2   : > { %1124 = vst [vmem:[%s1603_s22 + $0x688] sm:$0xff] %v868_v24  ;;  %1125 = vst [vmem:[%s1603_s22 + $0x690] sm:$0xff] %v869_v25  ;;  %v873_v35 = vadd.f32 %v1574_v5, %v615_v26  ;;  %v618_v37 = vmul.f32 %v1569_v1, %v360_v21  ;;  %v619_v38 = vmul.f32 %v1569_v1, %v361_v22  ;;  %v382_v25 = vld [vmem:[%s1562_s7 + $0x778] sm:$0xff] }
  0xc3   : > { %1126 = vst [vmem:[%s1603_s22 + $0x698] sm:$0xff] %v870_v30  ;;  %1127 = vst [vmem:[%s1603_s22 + $0x6a0] sm:$0xff] %v871_v31  ;;  %v874_v40 = vadd.f32 %v1574_v5, %v616_v33  ;;  %v620_v41 = vmul.f32 %v1569_v1, %v362_v27  ;;  %v621_v42 = vmul.f32 %v1569_v1, %v363_v28  ;;  %v383_v30 = vld [vmem:[%s1562_s7 + $0x780] sm:$0xff]  ;;  %v384_v31 = vld [vmem:[%s1562_s7 + $0x788] sm:$0xff] }
  0xc4   : > { %1128 = vst [vmem:[%s1603_s22 + $0x6a8] sm:$0xff] %v872_v32  ;;  %v622_v43 = vmul.f32 %v1569_v1, %v364_v29  ;;  %1129 = vst [vmem:[%s1603_s22 + $0x6b0] sm:$0xff] %v873_v35  ;;  %v875_v47 = vadd.f32 %v1574_v5, %v617_v36  ;;  %v876_v48 = vadd.f32 %v1574_v5, %v618_v37  ;;  %v385_v32 = vld [vmem:[%s1562_s7 + $0x790] sm:$0xff]  ;;  %v386_v37 = vld [vmem:[%s1562_s7 + $0x798] sm:$0xff] }
  0xc5   : > { %v877_v49 = vadd.f32 %v1574_v5, %v619_v38  ;;  %v623_v50 = vmul.f32 %v1569_v1, %v365_v34  ;;  %1130 = vst [vmem:[%s1603_s22 + $0x6b8] sm:$0xff] %v874_v40  ;;  %v878_v54 = vadd.f32 %v1574_v5, %v620_v41  ;;  %v879_v55 = vadd.f32 %v1574_v5, %v621_v42  ;;  %v387_v38 = vld [vmem:[%s1562_s7 + $0x7a0] sm:$0xff] }
  0xc6   : > { %v880_v56 = vadd.f32 %v1574_v5, %v622_v43  ;;  %v624_v57 = vmul.f32 %v1569_v1, %v366_v39  ;;  %1131 = vst [vmem:[%s1603_s22 + $0x6c0] sm:$0xff] %v875_v47  ;;  %1132 = vst [vmem:[%s1603_s22 + $0x6c8] sm:$0xff] %v876_v48  ;;  %v625_v60 = vmul.f32 %v1569_v1, %v367_v44  ;;  %v388_v39 = vld [vmem:[%s1562_s7 + $0x7a8] sm:$0xff]  ;;  %v389_v44 = vld [vmem:[%s1562_s7 + $0x7b0] sm:$0xff] }
  0xc7   : > { %1133 = vst [vmem:[%s1603_s22 + $0x6d0] sm:$0xff] %v877_v49  ;;  %v881_v59 = vadd.f32 %v1574_v5, %v623_v50  ;;  %v626_v61 = vmul.f32 %v1569_v1, %v368_v45  ;;  %v627_v62 = vmul.f32 %v1569_v1, %v369_v46  ;;  %1134 = vst [vmem:[%s1603_s22 + $0x6d8] sm:$0xff] %v878_v54  ;;  %v390_v49 = vld [vmem:[%s1562_s7 + $0x7b8] sm:$0xff]  ;;  %v391_v54 = vld [vmem:[%s1562_s7 + $0x7c0] sm:$0xff] }
  0xc8   : > { %1135 = vst [vmem:[%s1603_s22 + $0x6e0] sm:$0xff] %v879_v55  ;;  %1136 = vst [vmem:[%s1603_s22 + $0x6e8] sm:$0xff] %v880_v56  ;;  %v882_v0 = vadd.f32 %v1574_v5, %v624_v57  ;;  %v628_v2 = vmul.f32 %v1569_v1, %v370_v51  ;;  %v629_v3 = vmul.f32 %v1569_v1, %v371_v52  ;;  %v392_v55 = vld [vmem:[%s1562_s7 + $0x7c8] sm:$0xff]  ;;  %v393_v56 = vld [vmem:[%s1562_s7 + $0x7d0] sm:$0xff] }
  0xc9   : > { %v630_v4 = vmul.f32 %v1569_v1, %v372_v53  ;;  %1137 = vst [vmem:[%s1603_s22 + $0x6f0] sm:$0xff] %v881_v59  ;;  %v883_v9 = vadd.f32 %v1574_v5, %v625_v60  ;;  %v884_v10 = vadd.f32 %v1574_v5, %v626_v61  ;;  %v885_v11 = vadd.f32 %v1574_v5, %v627_v62  ;;  %v394_v61 = vld [vmem:[%s1562_s7 + $0x7d8] sm:$0xff]  ;;  %v395_v62 = vld [vmem:[%s1562_s7 + $0x7e0] sm:$0xff] }
  0xca   : > { %v631_v12 = vmul.f32 %v1569_v1, %v373_v58  ;;  %1138 = vst [vmem:[%s1603_s22 + $0x6f8] sm:$0xff] %v882_v0  ;;  %v886_v16 = vadd.f32 %v1574_v5, %v628_v2  ;;  %v887_v17 = vadd.f32 %v1574_v5, %v629_v3  ;;  %v632_v19 = vmul.f32 %v1569_v1, %v374_v63  ;;  %v396_v63 = vld [vmem:[%s1562_s7 + $0x7e8] sm:$0xff] }
  0xcb   : > { %v888_v18 = vadd.f32 %v1574_v5, %v630_v4  ;;  %1139 = vst [vmem:[%s1603_s22 + $0x700] sm:$0xff] %v883_v9  ;;  %1140 = vst [vmem:[%s1603_s22 + $0x708] sm:$0xff] %v884_v10  ;;  %v633_v22 = vmul.f32 %v1569_v1, %v375_v6  ;;  %v634_v23 = vmul.f32 %v1569_v1, %v376_v7  ;;  %v397_v6 = vld [vmem:[%s1562_s7 + $0x7f0] sm:$0xff] }
  0xcc   : > { %1141 = vst [vmem:[%s1603_s22 + $0x710] sm:$0xff] %v885_v11  ;;  %v889_v21 = vadd.f32 %v1574_v5, %v631_v12  ;;  %v635_v24 = vmul.f32 %v1569_v1, %v377_v8  ;;  %1142 = vst [vmem:[%s1603_s22 + $0x718] sm:$0xff] %v886_v16  ;;  %v890_v26 = vadd.f32 %v1574_v5, %v632_v19  ;;  %v398_v11 = vld [vmem:[%s1562_s7 + $0x7f8] sm:$0xff] }
  0xcd   : > { %1143 = vst [vmem:[%s1603_s22 + $0x720] sm:$0xff] %v887_v17  ;;  %1144 = vst [vmem:[%s1603_s22 + $0x728] sm:$0xff] %v888_v18  ;;  %v636_v27 = vmul.f32 %v1569_v1, %v378_v13  ;;  %v637_v28 = vmul.f32 %v1569_v1, %v379_v14  ;;  %v638_v29 = vmul.f32 %v1569_v1, %v380_v15 }
  0xce   : > { %1145 = vst [vmem:[%s1603_s22 + $0x730] sm:$0xff] %v889_v21  ;;  %v891_v33 = vadd.f32 %v1574_v5, %v633_v22  ;;  %v892_v34 = vadd.f32 %v1574_v5, %v634_v23  ;;  %v893_v35 = vadd.f32 %v1574_v5, %v635_v24  ;;  %v639_v36 = vmul.f32 %v1569_v1, %v381_v20 }
  0xcf   : > { %1146 = vst [vmem:[%s1603_s22 + $0x738] sm:$0xff] %v890_v26  ;;  %v894_v40 = vadd.f32 %v1574_v5, %v636_v27  ;;  %v895_v41 = vadd.f32 %v1574_v5, %v637_v28  ;;  %v896_v42 = vadd.f32 %v1574_v5, %v638_v29  ;;  %v640_v43 = vmul.f32 %v1569_v1, %v382_v25 }
  0xd0   : > { %1147 = vst [vmem:[%s1603_s22 + $0x740] sm:$0xff] %v891_v33  ;;  %1148 = vst [vmem:[%s1603_s22 + $0x748] sm:$0xff] %v892_v34  ;;  %v897_v45 = vadd.f32 %v1574_v5, %v639_v36  ;;  %v641_v46 = vmul.f32 %v1569_v1, %v383_v30  ;;  %v642_v47 = vmul.f32 %v1569_v1, %v384_v31 }
  0xd1   : > { %1149 = vst [vmem:[%s1603_s22 + $0x750] sm:$0xff] %v893_v35  ;;  %v643_v48 = vmul.f32 %v1569_v1, %v385_v32  ;;  %1150 = vst [vmem:[%s1603_s22 + $0x758] sm:$0xff] %v894_v40  ;;  %v898_v50 = vadd.f32 %v1574_v5, %v640_v43  ;;  %v644_v51 = vmul.f32 %v1569_v1, %v386_v37 }
  0xd2   : > { %1151 = vst [vmem:[%s1603_s22 + $0x760] sm:$0xff] %v895_v41  ;;  %1152 = vst [vmem:[%s1603_s22 + $0x768] sm:$0xff] %v896_v42  ;;  %v645_v52 = vmul.f32 %v1569_v1, %v387_v38  ;;  %v646_v53 = vmul.f32 %v1569_v1, %v388_v39  ;;  %v899_v57 = vadd.f32 %v1574_v5, %v641_v46 }
  0xd3   : > { %1153 = vst [vmem:[%s1603_s22 + $0x770] sm:$0xff] %v897_v45  ;;  %v900_v58 = vadd.f32 %v1574_v5, %v642_v47  ;;  %v901_v59 = vadd.f32 %v1574_v5, %v643_v48  ;;  %v647_v60 = vmul.f32 %v1569_v1, %v389_v44  ;;  %1154 = vst [vmem:[%s1603_s22 + $0x778] sm:$0xff] %v898_v50 }
  0xd4   : > { %v902_v0 = vadd.f32 %v1574_v5, %v644_v51  ;;  %v903_v2 = vadd.f32 %v1574_v5, %v645_v52  ;;  %v904_v3 = vadd.f32 %v1574_v5, %v646_v53  ;;  %v648_v4 = vmul.f32 %v1569_v1, %v390_v49  ;;  %1155 = vst [vmem:[%s1603_s22 + $0x780] sm:$0xff] %v899_v57 }
  0xd5   : > { %1156 = vst [vmem:[%s1603_s22 + $0x788] sm:$0xff] %v900_v58  ;;  %1157 = vst [vmem:[%s1603_s22 + $0x790] sm:$0xff] %v901_v59  ;;  %v905_v7 = vadd.f32 %v1574_v5, %v647_v60  ;;  %v649_v8 = vmul.f32 %v1569_v1, %v391_v54  ;;  %v650_v9 = vmul.f32 %v1569_v1, %v392_v55 }
  0xd6   : > { %v651_v10 = vmul.f32 %v1569_v1, %v393_v56  ;;  %1158 = vst [vmem:[%s1603_s22 + $0x798] sm:$0xff] %v902_v0  ;;  %1159 = vst [vmem:[%s1603_s22 + $0x7a0] sm:$0xff] %v903_v2  ;;  %v906_v12 = vadd.f32 %v1574_v5, %v648_v4  ;;  %v652_v13 = vmul.f32 %v1569_v1, %v394_v61 }
  0xd7   : > { %1160 = vst [vmem:[%s1603_s22 + $0x7a8] sm:$0xff] %v904_v3  ;;  %v653_v14 = vmul.f32 %v1569_v1, %v395_v62  ;;  %v654_v15 = vmul.f32 %v1569_v1, %v396_v63  ;;  %1161 = vst [vmem:[%s1603_s22 + $0x7b0] sm:$0xff] %v905_v7  ;;  %v907_v16 = vadd.f32 %v1574_v5, %v649_v8 }
  0xd8   : > { %v908_v17 = vadd.f32 %v1574_v5, %v650_v9  ;;  %v909_v18 = vadd.f32 %v1574_v5, %v651_v10  ;;  %v655_v19 = vmul.f32 %v1569_v1, %v397_v6  ;;  %1162 = vst [vmem:[%s1603_s22 + $0x7b8] sm:$0xff] %v906_v12  ;;  %v910_v20 = vadd.f32 %v1574_v5, %v652_v13 }
  0xd9   : > { %v911_v21 = vadd.f32 %v1574_v5, %v653_v14  ;;  %v912_v22 = vadd.f32 %v1574_v5, %v654_v15  ;;  %v656_v23 = vmul.f32 %v1569_v1, %v398_v11  ;;  %1163 = vst [vmem:[%s1603_s22 + $0x7c0] sm:$0xff] %v907_v16 }
  0xda   : > { %1164 = vst [vmem:[%s1603_s22 + $0x7c8] sm:$0xff] %v908_v17  ;;  %1165 = vst [vmem:[%s1603_s22 + $0x7d0] sm:$0xff] %v909_v18  ;;  %v913_v24 = vadd.f32 %v1574_v5, %v655_v19 }
  0xdb   : > { %1166 = vst [vmem:[%s1603_s22 + $0x7d8] sm:$0xff] %v910_v20  ;;  %1167 = vst [vmem:[%s1603_s22 + $0x7e0] sm:$0xff] %v911_v21  ;;  %v914_v1 = vadd.f32 %v1574_v5, %v656_v23 }
  0xdc   : > { %1168 = vst [vmem:[%s1603_s22 + $0x7e8] sm:$0xff] %v912_v22  ;;  %1169 = vst [vmem:[%s1603_s22 + $0x7f0] sm:$0xff] %v913_v24 }
  0xdd   : > { %1170 = vst [vmem:[%s1603_s22 + $0x7f8] sm:$0xff] %v914_v1 }
  0xde   : > { %1380 = shalt.err (!%p1377_p9)
}
  0xdf   : > { %s1381_s21 = scalar_lea.hbm %s2599_s9, 32768  ;;  %s1385_s27 = scalar_lea.hbm %s2651_s2, 131072 }
  0xe0   : > { %p1382_p13 = scmp.ne.s32.totalorder %s2599_s9, %s1381_s21  ;;  %p1386_p2 = scmp.lt.s32.totalorder %s2599_s9, %s2651_s2 }
  0xe1   : > { %p1387_p3 = scmp.lt.s32.totalorder %s1385_s27, %s1381_s21 }
  0xe2   : > { %p1383_p1 = pnand %p1382_p13, %p2660_p11 }
  0xe3   : > { %p1388_p6 = por %p1387_p3, %p1386_p2 }
  0xe4   : > { %p1384_p0 = pneg %p1383_p1 }
  0xe6   : > { %p1389_p10 = pnand %p1388_p6, %p1384_p0 }
  0xe8   : > { %1392 = shalt.err (!%p1389_p10)
}
  0xe9   : > { %s1440_s7 = smov 1024   ;;  %s1441_s30 = smov 64  }
  0xea   : > { %1282 = dma.vmem_to_hbm [thread:$0]  (%p2660_p11), %s2601_s6, 32768, %s2599_s9, %s1172_s10, %s1440_s7, %s1440_s7, %s1441_s30  }
  0xeb PF: > { %p1293_p12 = scmp.ge.s32.totalorder %s1433_s15, 2  ;;  %s1201_s4 = sand.u32 1, %s1421_s12  }
  0xec   : > { %p2661_p4 = scmp.ne.s32.totalorder %s2657_s24, 0  ;;  %s1202_s22 = scalar_lea.sflag [#allocation6], %s1201_s4 }
  0xee   : > { %p1289_p5 = pnand %p1293_p12, %p2661_p4 }
  0xf0   : > { %p1290_p7 = pneg %p1289_p5 }
  0xf2   : > { %1416 = dma.done.wait (%p1290_p7), %s1202_s22, 32768  }
  0xf3   : > { %1418 = vsyncadd (%p1290_p7), %s1202_s22, 4294934528  ;;  %p19_p8 = scmp.ge.s32.totalorder %s1485_s17, 6   ;;  %s2662_s12 = smov %s1425_s13 }
  0xf4   : > { %s2663_s13 = smov %s1429_s14  ;;  %s2664_s14 = smov %s1497_s20 }
  0xf5   : > { %s2665_s15 = smov %s1485_s17  ;;  %21 = sbr.rel (!%p19_p8) target bundleno = 10 (0xa), region = 69 }
  0xfa   :  { %1207 = vsyncpa [#allocation5], 1 }
  0xfb   :  { %1209 = vsyncpa [#allocation5 + $0x1], 1 }
  0xfc   :  { %1210 = vsyncpa [#allocation6], 1 }
  0xfd   :  { %1212 = vsyncpa [#allocation6 + $0x1], 1 }

</bundles_post_ra>
